<compile_context>
chip_gen: v7x
topology: tpu7x:2x2x1
jax: 0.10.0
libtpu: 0.0.40
codegen_flags: <defaults>
</compile_context>

<pallas_src>
import functools

import jax
import jax.numpy as jnp
from jax import lax
from jax.experimental import pallas as pl
from jax.experimental.pallas import tpu as pltpu

COS_EPS = 1e-6                      # nn.CosineSimilarity eps
COS_EPS_SQ = COS_EPS * COS_EPS
INV_COS_EPS = 1.0 / COS_EPS


def _round_up(x, m):
    return ((x + m - 1) // m) * m


def hssc_loss_kernel(labels_ref, feat_ref, out_ref,
                     sums_t_ref, counts_ref, colsum_ref, colsq_ref,
                     centers_t_ref, loss_ref, shift_ref,
                     *, num_classes, inv_n, inv_tau, epsilon, threshold1):
    """Grid = (2, num_row_tiles).  Axis 0: pass (0 = stats, 1 = loss)."""
    p = pl.program_id(0)                      # 0: class/column statistics pass
    t = pl.program_id(1)                      # row-tile index
    nt = pl.num_programs(1)

    fb = feat_ref[...]                        # [T, D]  bf16 (or f32)
    f32f = fb.astype(jnp.float32)             # VPU / EUP math in f32
    lbl = labels_ref[...]                     # [T, 1]  int32
    tile = fb.shape[0]

    # One-hot built in-kernel (VPU compare).  Out-of-range labels (e.g. the -1
    # padding rows) give an all-zero row and never contribute.
    oh = lax.broadcasted_iota(jnp.int32, (tile, num_classes), 1) == lbl      # [T, C]

    # f32 path: force full-precision MXU passes; bf16 operands are MXU-native.
    mxu_prec = (lax.Precision.HIGHEST if fb.dtype == jnp.float32
                else lax.Precision.DEFAULT)

    @pl.when(jnp.logical_and(p == 0, t == 0))
    def _init():
        sums_t_ref[...] = jnp.zeros_like(sums_t_ref)
        counts_ref[...] = jnp.zeros_like(counts_ref)
        colsum_ref[...] = jnp.zeros_like(colsum_ref)
        colsq_ref[...] = jnp.zeros_like(colsq_ref)
        loss_ref[...] = jnp.zeros_like(loss_ref)
        shift_ref[...] = jnp.zeros_like(shift_ref)

    @pl.when(p == 0)
    def _stats_pass():
        # Per-class feature sums, kept transposed [D, C] so per-class scalars
        # ([1, C]) broadcast along sublanes with no transposes anywhere.
        sums_t_ref[...] += lax.dot_general(
            fb, oh.astype(fb.dtype), (((0,), (0,)), ((), ())),
            preferred_element_type=jnp.float32, precision=mxu_prec)          # [D, C]
        # Counts: cheap sublane reduction (review: no MXU mat-vec for counts).
        counts_ref[...] += jnp.sum(oh.astype(jnp.float32), axis=0,
                                   keepdims=True)                            # [1, C]
        # Column stats for the denominator cosine (no materialized fsq temp).
        colsum_ref[...] += jnp.sum(f32f, axis=0, keepdims=True)              # [1, D]
        colsq_ref[...] += jnp.sum(f32f * f32f, axis=0, keepdims=True)        # [1, D]

        @pl.when(t == nt - 1)
        def _finalize_stats():
            counts = counts_ref[...]                                         # [1, C]
            inv_counts = pl.reciprocal(jnp.maximum(counts, 1.0), approx=False)
            centers_t = sums_t_ref[...] * inv_counts                         # [D, C]
            # Empty classes have an all-zero sums column -> center stays 0.
            c_sq = jnp.sum(centers_t * centers_t, axis=0, keepdims=True)     # [1, C]
            centers_n = centers_t * lax.rsqrt(
                jnp.maximum(c_sq, COS_EPS_SQ))                               # [D, C]
            centers_t_ref[...] = centers_n.astype(centers_t_ref.dtype)
            # x2 of cos_sim(gi[None, :], features, dim=0): column-sum direction.
            x2n = colsum_ref[...] * lax.rsqrt(
                jnp.maximum(colsq_ref[...], COS_EPS_SQ))                     # [1, D]
            colsum_ref[...] = x2n                                            # reuse buffer
            # Single global LSE shift: |x1n| <= 1  =>  z <= max|x2n| / tau.
            shift_ref[...] = jnp.max(jnp.abs(x2n), axis=1,
                                     keepdims=True) * inv_tau                # [1, 1]

    @pl.when(p == 1)
    def _loss_pass():
        # Positive logit: one full-K (K=D) MXU contraction against the
        # pre-normalized centers, then a short one-hot lane select over C.
        s = lax.dot_general(
            fb, centers_t_ref[...], (((1,), (0,)), ((), ())),
            preferred_element_type=jnp.float32, precision=mxu_prec)          # [T, C]
        row_sq = jnp.sum(f32f * f32f, axis=1, keepdims=True)                 # [T, 1]
        inv_norm_g = lax.rsqrt(jnp.maximum(row_sq, COS_EPS_SQ))              # [T, 1]
        cos_pos = jnp.sum(jnp.where(oh, s, 0.0), axis=1,
                          keepdims=True) * inv_norm_g                        # [T, 1]

        # Denominator: cos_sim(gi[None, :], features, dim=0) -> length-D row.
        # x1n = f / max(|f|, eps) == clip(f / eps, -1, 1)  (no [T, D] divide).
        x2n = colsum_ref[...]                                                # [1, D]
        x1n = jnp.clip(f32f * INV_COS_EPS, -1.0, 1.0)                        # [T, D]
        z = (x1n * x2n) * inv_tau                                            # [T, D]
        shift = shift_ref[...]                                               # [1, 1]
        lse = shift + jnp.log(
            jnp.sum(jnp.exp(z - shift), axis=1, keepdims=True))              # [T, 1]

        # Gating: max(g_i) > threshold1 AND cos_pos > epsilon, else 0.
        gmax = jnp.max(f32f, axis=1, keepdims=True)                          # [T, 1]
        keep = jnp.logical_and(gmax > threshold1, cos_pos > epsilon)
        loss_i = jnp.where(keep, lse - cos_pos * inv_tau, 0.0)               # [T, 1]
        loss_ref[...] += jnp.sum(loss_i, axis=0, keepdims=True)              # [1, 1]

        @pl.when(t == nt - 1)
        def _write_out():
            out_ref[...] = loss_ref[...] * inv_n


def hssc_loss(features, labels, num_classes, *, tau=1.0, epsilon=0.1,
              threshold1=0.9, tile_n=512, feature_dtype=jnp.bfloat16,
              vmem_limit_bytes=32 * 1024 * 1024):
    """features: [N, D] float; labels: [N] int in [0, num_classes).

    Returns the scalar float32 loss.  feature_dtype=jnp.bfloat16 (default)
    streams features at half the HBM traffic; jnp.float32 reproduces the
    module's full-precision arithmetic exactly.
    """
    n, d = features.shape
    # Row tile: multiple of 8 (sublane granularity); biggest-that-fits is best
    # since the kernel is HBM-bound at production N.  Zero-padded rows get
    # label -1 and contribute nothing (see kernel header).
    tile = _round_up(min(tile_n, max(n, 1)), 8)
    n_pad = _round_up(n, tile)
    num_tiles = n_pad // tile

    f = features.astype(feature_dtype)
    lbl = labels.astype(jnp.int32)
    if n_pad != n:
        f = jnp.pad(f, ((0, n_pad - n), (0, 0)))
        lbl = jnp.pad(lbl, (0, n_pad - n), constant_values=-1)
    lbl = lbl.reshape(n_pad, 1)   # [N,1] column: contiguous tile-sized label DMAs

    kernel = functools.partial(
        hssc_loss_kernel, num_classes=num_classes, inv_n=1.0 / n,
        inv_tau=1.0 / tau, epsilon=epsilon, threshold1=threshold1)

    grid_spec = pltpu.PrefetchScalarGridSpec(
        num_scalar_prefetch=0,
        grid=(2, num_tiles),                                   # (pass, row tile)
        in_specs=[
            pl.BlockSpec((tile, 1), lambda p, t: (t, 0)),      # labels column
            pl.BlockSpec((tile, d), lambda p, t: (t, 0)),      # feature rows
        ],
        out_specs=pl.BlockSpec((1, 1), lambda p, t: (0, 0)),   # scalar loss
        scratch_shapes=[
            pltpu.VMEM((d, num_classes), jnp.float32),   # per-class sums [D, C]
            pltpu.VMEM((1, num_classes), jnp.float32),   # per-class counts
            pltpu.VMEM((1, d), jnp.float32),             # column sums -> x2n
            pltpu.VMEM((1, d), jnp.float32),             # column sq-sums
            pltpu.VMEM((d, num_classes), feature_dtype), # normalized centers (MXU)
            pltpu.VMEM((1, 1), jnp.float32),             # running loss sum
            pltpu.VMEM((1, 1), jnp.float32),             # global LSE shift
        ],
    )

    out = pl.pallas_call(
        kernel,
        out_shape=jax.ShapeDtypeStruct((1, 1), jnp.float32),
        grid_spec=grid_spec,
        compiler_params=pltpu.CompilerParams(
            # Both grid axes carry cross-iteration scratch state (class stats /
            # running loss), so both are reductions.  See TODO(synk) in the
            # header for the v7x two-TensorCore per-core-partials variant.
            dimension_semantics=("arbitrary", "arbitrary"),
            vmem_limit_bytes=vmem_limit_bytes,
        ),
    )(lbl, f)
    return out[0, 0]


def hssc_loss_ref(features, labels, num_classes, *, tau=1.0, epsilon=0.1,
                  threshold1=0.9, center_round_dtype=None):
    """Pure-JAX mirror of the PyTorch forward (testing only).

    center_round_dtype mimics the kernel's MXU-operand dtype for the
    normalized class centers (None = full f32 = exact module semantics).
    """
    f = features.astype(jnp.float32)
    oh = jax.nn.one_hot(labels, num_classes, dtype=jnp.float32)              # [N, C]
    counts = jnp.sum(oh, axis=0)                                             # [C]
    sums = jnp.sum(oh[:, :, None] * f[:, None, :], axis=0)                   # [C, D]
    centers = jnp.where(counts[:, None] > 0,
                        sums / jnp.maximum(counts[:, None], 1.0), 0.0)       # [C, D]
    centers_n = centers / jnp.maximum(
        jnp.linalg.norm(centers, axis=1, keepdims=True), COS_EPS)
    if center_round_dtype is not None:
        centers_n = centers_n.astype(center_round_dtype).astype(jnp.float32)
    cc = centers_n[labels]                                                   # [N, D]
    cos_pos = jnp.sum(f * cc, axis=1) / jnp.maximum(
        jnp.linalg.norm(f, axis=1), COS_EPS)

    col_sum = jnp.sum(f, axis=0)
    col_norm = jnp.sqrt(jnp.sum(f * f, axis=0))
    x2n = col_sum / jnp.maximum(col_norm, COS_EPS)                           # [D]
    x1n = f / jnp.maximum(jnp.abs(f), COS_EPS)                               # [N, D]
    denom = jnp.sum(jnp.exp(x1n * x2n[None, :] / tau), axis=1)               # [N]

    loss_i = -(cos_pos / tau) + jnp.log(denom)
    mask = jnp.logical_and(jnp.max(f, axis=1) > threshold1, cos_pos > epsilon)
    return jnp.mean(jnp.where(mask, loss_i, 0.0))


if __name__ == "__main__":
    C, D = 8, 128
    k1, k2, k3, k4 = jax.random.split(jax.random.PRNGKey(0), 4)

    # --- f32 path: exact module semantics, multi-tile grid (3 tiles x 16 rows).
    n1 = 48
    feats32 = jax.random.normal(k1, (n1, D), dtype=jnp.float32)
    labels1 = jax.random.randint(k2, (n1,), 0, C, dtype=jnp.int32)
    out32 = jax.block_until_ready(
        hssc_loss(feats32, labels1, C, tile_n=16, feature_dtype=jnp.float32))
    ref32 = hssc_loss_ref(feats32, labels1, C)
    assert jnp.isfinite(out32), float(out32)
    assert jnp.allclose(out32, ref32, rtol=1e-5, atol=1e-4), \
        (float(out32), float(ref32))

    # --- bf16-streaming path (review): half the HBM traffic, MXU-native bf16.
    #     Also exercises zero-padding of a ragged batch (40 -> 48 rows).
    n2 = 40
    feats = jax.random.normal(k3, (n2, D), dtype=jnp.float32)
    labels2 = jax.random.randint(k4, (n2,), 0, C, dtype=jnp.int32)
    out16 = jax.block_until_ready(
        hssc_loss(feats, labels2, C, tile_n=16, feature_dtype=jnp.bfloat16))
    # Reference with matching input/center rounding (tight check) ...
    ref16 = hssc_loss_ref(feats.astype(jnp.bfloat16), labels2, C,
                          center_round_dtype=jnp.bfloat16)
    # ... and the full-precision reference (loose sanity bound).
    ref_full = hssc_loss_ref(feats, labels2, C)
    assert jnp.isfinite(out16), float(out16)
    assert jnp.allclose(out16, ref16, rtol=1e-3, atol=1e-3), \
        (float(out16), float(ref16))
    assert jnp.allclose(out16, ref_full, rtol=5e-2, atol=5e-2), \
        (float(out16), float(ref_full))

    print("KERNEL_OK")
</pallas_src>

<mosaic_0001>
module attributes {stable_mosaic.version = 11 : i64} {
  func.func @hssc_loss_kernel(%arg0: i32, %arg1: i32, %arg2: memref<16x1xi32, #tpu.memory_space<vmem>>, %arg3: memref<16x128xf32, #tpu.memory_space<vmem>>, %arg4: memref<1x1xf32, #tpu.memory_space<vmem>>, %arg5: memref<128x8xf32, #tpu.memory_space<vmem>>, %arg6: memref<1x8xf32, #tpu.memory_space<vmem>>, %arg7: memref<1x128xf32, #tpu.memory_space<vmem>>, %arg8: memref<1x128xf32, #tpu.memory_space<vmem>>, %arg9: memref<128x8xf32, #tpu.memory_space<vmem>>, %arg10: memref<1x1xf32, #tpu.memory_space<vmem>>, %arg11: memref<1x1xf32, #tpu.memory_space<vmem>>) attributes {dimension_semantics = [#tpu.dimension_semantics<arbitrary>, #tpu.dimension_semantics<arbitrary>], iteration_bounds = array<i64: 2, 3>, scalar_prefetch = 0 : i64, scratch_operands = 7 : i64, tpu.core_type = #tpu.core_type<tc>, window_params = [{transform_indices = @transform_0, window_bounds = array<i64: 16, 1>}, {transform_indices = @transform_1, window_bounds = array<i64: 16, 128>}, {pipeline_mode = #tpu.pipeline_mode<synchronous>, transform_indices = @transform_2, window_bounds = array<i64: 1, 1>}]} {
    %c0 = arith.constant 0 : index
    %c0_0 = arith.constant 0 : index
    %0 = vector.load %arg3[%c0, %c0_0] : memref<16x128xf32, #tpu.memory_space<vmem>>, vector<16x128xf32>
    %c0_1 = arith.constant 0 : index
    %c0_2 = arith.constant 0 : index
    %1 = vector.load %arg2[%c0_1, %c0_2] : memref<16x1xi32, #tpu.memory_space<vmem>>, vector<16x1xi32>
    %2 = tpu.iota {dimensions = array<i32: 1>} : vector<16x8xi32>
    %3 = vector.broadcast %1 : vector<16x1xi32> to vector<16x8xi32>
    %4 = arith.cmpi eq, %2, %3 : vector<16x8xi32>
    %c0_i32 = arith.constant 0 : i32
    %5 = arith.cmpi eq, %arg0, %c0_i32 : i32
    %c0_i32_3 = arith.constant 0 : i32
    %6 = arith.cmpi eq, %arg1, %c0_i32_3 : i32
    %7 = arith.andi %5, %6 : i1
    %8 = arith.extui %7 : i1 to i32
    %c0_i32_4 = arith.constant 0 : i32
    %9 = arith.cmpi ne, %8, %c0_i32_4 : i32
    scf.if %9 {
      %cst = arith.constant 0.000000e+00 : f32
      %16 = vector.broadcast %cst : f32 to vector<128x8xf32>
      %c0_8 = arith.constant 0 : index
      %c0_9 = arith.constant 0 : index
      %17 = vector.load %arg5[%c0_8, %c0_9] : memref<128x8xf32, #tpu.memory_space<vmem>>, vector<128x8xf32>
      tpu.vector_store %arg5[%c0_8, %c0_9], %16 {strides = array<i32>} : memref<128x8xf32, #tpu.memory_space<vmem>>, vector<128x8xf32>,
      %cst_10 = arith.constant 0.000000e+00 : f32
      %18 = vector.broadcast %cst_10 : f32 to vector<1x8xf32>
      %c0_11 = arith.constant 0 : index
      %c0_12 = arith.constant 0 : index
      %19 = vector.load %arg6[%c0_11, %c0_12] : memref<1x8xf32, #tpu.memory_space<vmem>>, vector<1x8xf32>
      tpu.vector_store %arg6[%c0_11, %c0_12], %18 {strides = array<i32>} : memref<1x8xf32, #tpu.memory_space<vmem>>, vector<1x8xf32>,
      %cst_13 = arith.constant 0.000000e+00 : f32
      %20 = vector.broadcast %cst_13 : f32 to vector<1x128xf32>
      %c0_14 = arith.constant 0 : index
      %c0_15 = arith.constant 0 : index
      %21 = vector.load %arg7[%c0_14, %c0_15] : memref<1x128xf32, #tpu.memory_space<vmem>>, vector<1x128xf32>
      tpu.vector_store %arg7[%c0_14, %c0_15], %20 {strides = array<i32>} : memref<1x128xf32, #tpu.memory_space<vmem>>, vector<1x128xf32>,
      %cst_16 = arith.constant 0.000000e+00 : f32
      %22 = vector.broadcast %cst_16 : f32 to vector<1x128xf32>
      %c0_17 = arith.constant 0 : index
      %c0_18 = arith.constant 0 : index
      %23 = vector.load %arg8[%c0_17, %c0_18] : memref<1x128xf32, #tpu.memory_space<vmem>>, vector<1x128xf32>
      tpu.vector_store %arg8[%c0_17, %c0_18], %22 {strides = array<i32>} : memref<1x128xf32, #tpu.memory_space<vmem>>, vector<1x128xf32>,
      %cst_19 = arith.constant 0.000000e+00 : f32
      %24 = vector.broadcast %cst_19 : f32 to vector<1x1xf32>
      %c0_20 = arith.constant 0 : index
      %c0_21 = arith.constant 0 : index
      %25 = vector.load %arg10[%c0_20, %c0_21] : memref<1x1xf32, #tpu.memory_space<vmem>>, vector<1x1xf32>
      tpu.vector_store %arg10[%c0_20, %c0_21], %24 {strides = array<i32>} : memref<1x1xf32, #tpu.memory_space<vmem>>, vector<1x1xf32>,
      %cst_22 = arith.constant 0.000000e+00 : f32
      %26 = vector.broadcast %cst_22 : f32 to vector<1x1xf32>
      %c0_23 = arith.constant 0 : index
      %c0_24 = arith.constant 0 : index
      %27 = vector.load %arg11[%c0_23, %c0_24] : memref<1x1xf32, #tpu.memory_space<vmem>>, vector<1x1xf32>
      tpu.vector_store %arg11[%c0_23, %c0_24], %26 {strides = array<i32>} : memref<1x1xf32, #tpu.memory_space<vmem>>, vector<1x1xf32>,
    } else {
    }
    %c0_i32_5 = arith.constant 0 : i32
    %10 = arith.cmpi eq, %arg0, %c0_i32_5 : i32
    %11 = arith.extui %10 : i1 to i32
    %c0_i32_6 = arith.constant 0 : i32
    %12 = arith.cmpi ne, %11, %c0_i32_6 : i32
    scf.if %12 {
      %c0_8 = arith.constant 0 : index
      %c0_9 = arith.constant 0 : index
      %16 = vector.load %arg5[%c0_8, %c0_9] : memref<128x8xf32, #tpu.memory_space<vmem>>, vector<128x8xf32>
      %17 = arith.extui %4 : vector<16x8xi1> to vector<16x8xi32>
      %18 = arith.sitofp %17 : vector<16x8xi32> to vector<16x8xf32>
      %cst = arith.constant dense<0.000000e+00> : vector<128x8xf32>
      %19 = tpu.matmul %0, %18, %cst {dimension_numbers = #tpu.dot_dimension_numbers<[0], [0], [1], [1], [0, 1, 1, 1], [], []>, precision = #tpu.contract_precision<fp32>} : vector<16x128xf32>, vector<16x8xf32>, vector<128x8xf32> -> vector<128x8xf32>
      %20 = arith.addf %16, %19 : vector<128x8xf32>
      %c0_10 = arith.constant 0 : index
      %c0_11 = arith.constant 0 : index
      %21 = vector.load %arg5[%c0_10, %c0_11] : memref<128x8xf32, #tpu.memory_space<vmem>>, vector<128x8xf32>
      tpu.vector_store %arg5[%c0_10, %c0_11], %20 {strides = array<i32>} : memref<128x8xf32, #tpu.memory_space<vmem>>, vector<128x8xf32>,
      %c0_12 = arith.constant 0 : index
      %c0_13 = arith.constant 0 : index
      %22 = vector.load %arg6[%c0_12, %c0_13] : memref<1x8xf32, #tpu.memory_space<vmem>>, vector<1x8xf32>
      %23 = arith.extui %4 : vector<16x8xi1> to vector<16x8xi32>
      %24 = arith.sitofp %23 : vector<16x8xi32> to vector<16x8xf32>
      %cst_14 = arith.constant dense<0.000000e+00> : vector<8xf32>
      %25 = vector.multi_reduction <add>, %24, %cst_14 [0] : vector<16x8xf32> to vector<8xf32>
      %26 = vector.shape_cast %25 : vector<8xf32> to vector<1x8xf32>
      %27 = arith.addf %22, %26 : vector<1x8xf32>
      %c0_15 = arith.constant 0 : index
      %c0_16 = arith.constant 0 : index
      %28 = vector.load %arg6[%c0_15, %c0_16] : memref<1x8xf32, #tpu.memory_space<vmem>>, vector<1x8xf32>
      tpu.vector_store %arg6[%c0_15, %c0_16], %27 {strides = array<i32>} : memref<1x8xf32, #tpu.memory_space<vmem>>, vector<1x8xf32>,
      %c0_17 = arith.constant 0 : index
      %c0_18 = arith.constant 0 : index
      %29 = vector.load %arg7[%c0_17, %c0_18] : memref<1x128xf32, #tpu.memory_space<vmem>>, vector<1x128xf32>
      %cst_19 = arith.constant dense<0.000000e+00> : vector<128xf32>
      %30 = vector.multi_reduction <add>, %0, %cst_19 [0] : vector<16x128xf32> to vector<128xf32>
      %31 = vector.shape_cast %30 : vector<128xf32> to vector<1x128xf32>
      %32 = arith.addf %29, %31 : vector<1x128xf32>
      %c0_20 = arith.constant 0 : index
      %c0_21 = arith.constant 0 : index
      %33 = vector.load %arg7[%c0_20, %c0_21] : memref<1x128xf32, #tpu.memory_space<vmem>>, vector<1x128xf32>
      tpu.vector_store %arg7[%c0_20, %c0_21], %32 {strides = array<i32>} : memref<1x128xf32, #tpu.memory_space<vmem>>, vector<1x128xf32>,
      %c0_22 = arith.constant 0 : index
      %c0_23 = arith.constant 0 : index
      %34 = vector.load %arg8[%c0_22, %c0_23] : memref<1x128xf32, #tpu.memory_space<vmem>>, vector<1x128xf32>
      %35 = arith.mulf %0, %0 : vector<16x128xf32>
      %cst_24 = arith.constant dense<0.000000e+00> : vector<128xf32>
      %36 = vector.multi_reduction <add>, %35, %cst_24 [0] : vector<16x128xf32> to vector<128xf32>
      %37 = vector.shape_cast %36 : vector<128xf32> to vector<1x128xf32>
      %38 = arith.addf %34, %37 : vector<1x128xf32>
      %c0_25 = arith.constant 0 : index
      %c0_26 = arith.constant 0 : index
      %39 = vector.load %arg8[%c0_25, %c0_26] : memref<1x128xf32, #tpu.memory_space<vmem>>, vector<1x128xf32>
      tpu.vector_store %arg8[%c0_25, %c0_26], %38 {strides = array<i32>} : memref<1x128xf32, #tpu.memory_space<vmem>>, vector<1x128xf32>,
      %c2_i32 = arith.constant 2 : i32
      %40 = arith.cmpi eq, %arg1, %c2_i32 : i32
      %41 = arith.extui %40 : i1 to i32
      %c0_i32_27 = arith.constant 0 : i32
      %42 = arith.cmpi ne, %41, %c0_i32_27 : i32
      scf.if %42 {
        %c0_28 = arith.constant 0 : index
        %c0_29 = arith.constant 0 : index
        %43 = vector.load %arg6[%c0_28, %c0_29] : memref<1x8xf32, #tpu.memory_space<vmem>>, vector<1x8xf32>
        %cst_30 = arith.constant 1.000000e+00 : f32
        %44 = vector.broadcast %cst_30 : f32 to vector<1x8xf32>
        %45 = arith.maximumf %43, %44 : vector<1x8xf32>
        %46 = tpu.reciprocal %45 : vector<1x8xf32> -> vector<1x8xf32>
        %c0_31 = arith.constant 0 : index
        %c0_32 = arith.constant 0 : index
        %47 = vector.load %arg5[%c0_31, %c0_32] : memref<128x8xf32, #tpu.memory_space<vmem>>, vector<128x8xf32>
        %48 = vector.broadcast %46 : vector<1x8xf32> to vector<128x8xf32>
        %49 = arith.mulf %47, %48 : vector<128x8xf32>
        %50 = arith.mulf %49, %49 : vector<128x8xf32>
        %cst_33 = arith.constant dense<0.000000e+00> : vector<8xf32>
        %51 = vector.multi_reduction <add>, %50, %cst_33 [0] : vector<128x8xf32> to vector<8xf32>
        %52 = vector.shape_cast %51 : vector<8xf32> to vector<1x8xf32>
        %cst_34 = arith.constant 9.99999996E-13 : f32
        %53 = vector.broadcast %cst_34 : f32 to vector<1x8xf32>
        %54 = arith.maximumf %52, %53 : vector<1x8xf32>
        %55 = math.rsqrt %54 : vector<1x8xf32>
        %56 = vector.broadcast %55 : vector<1x8xf32> to vector<128x8xf32>
        %57 = arith.mulf %49, %56 : vector<128x8xf32>
        %c0_35 = arith.constant 0 : index
        %c0_36 = arith.constant 0 : index
        %58 = vector.load %arg9[%c0_35, %c0_36] : memref<128x8xf32, #tpu.memory_space<vmem>>, vector<128x8xf32>
        tpu.vector_store %arg9[%c0_35, %c0_36], %57 {strides = array<i32>} : memref<128x8xf32, #tpu.memory_space<vmem>>, vector<128x8xf32>,
        %c0_37 = arith.constant 0 : index
        %c0_38 = arith.constant 0 : index
        %59 = vector.load %arg7[%c0_37, %c0_38] : memref<1x128xf32, #tpu.memory_space<vmem>>, vector<1x128xf32>
        %c0_39 = arith.constant 0 : index
        %c0_40 = arith.constant 0 : index
        %60 = vector.load %arg8[%c0_39, %c0_40] : memref<1x128xf32, #tpu.memory_space<vmem>>, vector<1x128xf32>
        %cst_41 = arith.constant 9.99999996E-13 : f32
        %61 = vector.broadcast %cst_41 : f32 to vector<1x128xf32>
        %62 = arith.maximumf %60, %61 : vector<1x128xf32>
        %63 = math.rsqrt %62 : vector<1x128xf32>
        %64 = arith.mulf %59, %63 : vector<1x128xf32>
        %c0_42 = arith.constant 0 : index
        %c0_43 = arith.constant 0 : index
        %65 = vector.load %arg7[%c0_42, %c0_43] : memref<1x128xf32, #tpu.memory_space<vmem>>, vector<1x128xf32>
        tpu.vector_store %arg7[%c0_42, %c0_43], %64 {strides = array<i32>} : memref<1x128xf32, #tpu.memory_space<vmem>>, vector<1x128xf32>,
        %66 = math.absf %64 : vector<1x128xf32>
        %cst_44 = arith.constant dense<0xFF800000> : vector<1xf32>
        %67 = vector.multi_reduction <maximumf>, %66, %cst_44 [1] : vector<1x128xf32> to vector<1xf32>
        %68 = vector.shape_cast %67 : vector<1xf32> to vector<1x1xf32>
        %cst_45 = arith.constant 1.000000e+00 : f32
        %69 = vector.broadcast %cst_45 : f32 to vector<1x1xf32>
        %70 = arith.mulf %68, %69 : vector<1x1xf32>
        %c0_46 = arith.constant 0 : index
        %c0_47 = arith.constant 0 : index
        %71 = vector.load %arg11[%c0_46, %c0_47] : memref<1x1xf32, #tpu.memory_space<vmem>>, vector<1x1xf32>
        tpu.vector_store %arg11[%c0_46, %c0_47], %70 {strides = array<i32>} : memref<1x1xf32, #tpu.memory_space<vmem>>, vector<1x1xf32>,
      } else {
      }
    } else {
    }
    %c1_i32 = arith.constant 1 : i32
    %13 = arith.cmpi eq, %arg0, %c1_i32 : i32
    %14 = arith.extui %13 : i1 to i32
    %c0_i32_7 = arith.constant 0 : i32
    %15 = arith.cmpi ne, %14, %c0_i32_7 : i32
    scf.if %15 {
      %c0_8 = arith.constant 0 : index
      %c0_9 = arith.constant 0 : index
      %16 = vector.load %arg9[%c0_8, %c0_9] : memref<128x8xf32, #tpu.memory_space<vmem>>, vector<128x8xf32>
      %cst = arith.constant dense<0.000000e+00> : vector<16x8xf32>
      %17 = tpu.matmul %0, %16, %cst {dimension_numbers = #tpu.dot_dimension_numbers<[1], [0], [0], [1], [0, 0, 1, 1], [], []>, precision = #tpu.contract_precision<fp32>} : vector<16x128xf32>, vector<128x8xf32>, vector<16x8xf32> -> vector<16x8xf32>
      %18 = arith.mulf %0, %0 : vector<16x128xf32>
      %cst_10 = arith.constant dense<0.000000e+00> : vector<16xf32>
      %19 = vector.multi_reduction <add>, %18, %cst_10 [1] : vector<16x128xf32> to vector<16xf32>
      %20 = vector.shape_cast %19 : vector<16xf32> to vector<16x1xf32>
      %cst_11 = arith.constant 9.99999996E-13 : f32
      %21 = vector.broadcast %cst_11 : f32 to vector<16x1xf32>
      %22 = arith.maximumf %20, %21 : vector<16x1xf32>
      %23 = math.rsqrt %22 : vector<16x1xf32>
      %cst_12 = arith.constant 0.000000e+00 : f32
      %24 = vector.broadcast %cst_12 : f32 to vector<16x8xf32>
      %25 = arith.select %4, %17, %24 : vector<16x8xi1>, vector<16x8xf32>
      %cst_13 = arith.constant dense<0.000000e+00> : vector<16xf32>
      %26 = vector.multi_reduction <add>, %25, %cst_13 [1] : vector<16x8xf32> to vector<16xf32>
      %27 = vector.shape_cast %26 : vector<16xf32> to vector<16x1xf32>
      %28 = arith.mulf %27, %23 : vector<16x1xf32>
      %c0_14 = arith.constant 0 : index
      %c0_15 = arith.constant 0 : index
      %29 = vector.load %arg7[%c0_14, %c0_15] : memref<1x128xf32, #tpu.memory_space<vmem>>, vector<1x128xf32>
      %cst_16 = arith.constant 1.000000e+06 : f32
      %30 = vector.broadcast %cst_16 : f32 to vector<16x128xf32>
      %31 = arith.mulf %0, %30 : vector<16x128xf32>
      %cst_17 = arith.constant -1.000000e+00 : f32
      %cst_18 = arith.constant 1.000000e+00 : f32
      %32 = vector.broadcast %cst_17 : f32 to vector<16x128xf32>
      %33 = arith.maximumf %32, %31 : vector<16x128xf32>
      %34 = vector.broadcast %cst_18 : f32 to vector<16x128xf32>
      %35 = arith.minimumf %34, %33 : vector<16x128xf32>
      %36 = vector.broadcast %29 : vector<1x128xf32> to vector<16x128xf32>
      %37 = arith.mulf %35, %36 : vector<16x128xf32>
      %cst_19 = arith.constant 1.000000e+00 : f32
      %38 = vector.broadcast %cst_19 : f32 to vector<16x128xf32>
      %39 = arith.mulf %37, %38 : vector<16x128xf32>
      %c0_20 = arith.constant 0 : index
      %c0_21 = arith.constant 0 : index
      %40 = vector.load %arg11[%c0_20, %c0_21] : memref<1x1xf32, #tpu.memory_space<vmem>>, vector<1x1xf32>
      %41 = vector.broadcast %40 : vector<1x1xf32> to vector<16x128xf32>
      %42 = arith.subf %39, %41 : vector<16x128xf32>
      %43 = math.exp %42 : vector<16x128xf32>
      %cst_22 = arith.constant dense<0.000000e+00> : vector<16xf32>
      %44 = vector.multi_reduction <add>, %43, %cst_22 [1] : vector<16x128xf32> to vector<16xf32>
      %45 = vector.shape_cast %44 : vector<16xf32> to vector<16x1xf32>
      %46 = math.log %45 : vector<16x1xf32>
      %47 = vector.broadcast %40 : vector<1x1xf32> to vector<16x1xf32>
      %48 = arith.addf %47, %46 : vector<16x1xf32>
      %cst_23 = arith.constant dense<0xFF800000> : vector<16xf32>
      %49 = vector.multi_reduction <maximumf>, %0, %cst_23 [1] : vector<16x128xf32> to vector<16xf32>
      %50 = vector.shape_cast %49 : vector<16xf32> to vector<16x1xf32>
      %cst_24 = arith.constant 0.899999976 : f32
      %51 = vector.broadcast %cst_24 : f32 to vector<16x1xf32>
      %52 = arith.cmpf ogt, %50, %51 : vector<16x1xf32>
      %cst_25 = arith.constant 1.000000e-01 : f32
      %53 = vector.broadcast %cst_25 : f32 to vector<16x1xf32>
      %54 = arith.cmpf ogt, %28, %53 : vector<16x1xf32>
      %55 = arith.andi %52, %54 : vector<16x1xi1>
      %cst_26 = arith.constant 1.000000e+00 : f32
      %56 = vector.broadcast %cst_26 : f32 to vector<16x1xf32>
      %57 = arith.mulf %28, %56 : vector<16x1xf32>
      %58 = arith.subf %48, %57 : vector<16x1xf32>
      %cst_27 = arith.constant 0.000000e+00 : f32
      %59 = vector.broadcast %cst_27 : f32 to vector<16x1xf32>
      %60 = arith.select %55, %58, %59 : vector<16x1xi1>, vector<16x1xf32>
      %c0_28 = arith.constant 0 : index
      %c0_29 = arith.constant 0 : index
      %61 = vector.load %arg10[%c0_28, %c0_29] : memref<1x1xf32, #tpu.memory_space<vmem>>, vector<1x1xf32>
      %cst_30 = arith.constant dense<0.000000e+00> : vector<1xf32>
      %62 = vector.multi_reduction <add>, %60, %cst_30 [0] : vector<16x1xf32> to vector<1xf32>
      %63 = vector.shape_cast %62 : vector<1xf32> to vector<1x1xf32>
      %64 = arith.addf %61, %63 : vector<1x1xf32>
      %c0_31 = arith.constant 0 : index
      %c0_32 = arith.constant 0 : index
      %65 = vector.load %arg10[%c0_31, %c0_32] : memref<1x1xf32, #tpu.memory_space<vmem>>, vector<1x1xf32>
      tpu.vector_store %arg10[%c0_31, %c0_32], %64 {strides = array<i32>} : memref<1x1xf32, #tpu.memory_space<vmem>>, vector<1x1xf32>,
      %c2_i32 = arith.constant 2 : i32
      %66 = arith.cmpi eq, %arg1, %c2_i32 : i32
      %67 = arith.extui %66 : i1 to i32
      %c0_i32_33 = arith.constant 0 : i32
      %68 = arith.cmpi ne, %67, %c0_i32_33 : i32
      scf.if %68 {
        %c0_34 = arith.constant 0 : index
        %c0_35 = arith.constant 0 : index
        %69 = vector.load %arg10[%c0_34, %c0_35] : memref<1x1xf32, #tpu.memory_space<vmem>>, vector<1x1xf32>
        %cst_36 = arith.constant 0.020833334 : f32
        %70 = vector.broadcast %cst_36 : f32 to vector<1x1xf32>
        %71 = arith.mulf %69, %70 : vector<1x1xf32>
        %c0_37 = arith.constant 0 : index
        %c0_38 = arith.constant 0 : index
        %72 = vector.load %arg4[%c0_37, %c0_38] : memref<1x1xf32, #tpu.memory_space<vmem>>, vector<1x1xf32>
        tpu.vector_store %arg4[%c0_37, %c0_38], %71 {strides = array<i32>} : memref<1x1xf32, #tpu.memory_space<vmem>>, vector<1x1xf32>,
      } else {
      }
    } else {
    }
    return
  }
  func.func @transform_0(%arg0: i32, %arg1: i32) -> (i32, i32) {
    %c0_i32 = arith.constant 0 : i32
    %c0_i32_0 = arith.constant 0 : i32
    return %arg1, %c0_i32 : i32, i32
  }
  func.func @transform_1(%arg0: i32, %arg1: i32) -> (i32, i32) {
    %c0_i32 = arith.constant 0 : i32
    %c0_i32_0 = arith.constant 0 : i32
    return %arg1, %c0_i32 : i32, i32
  }
  func.func @transform_2(%arg0: i32, %arg1: i32) -> (i32, i32) {
    %c0_i32 = arith.constant 0 : i32
    %c0_i32_0 = arith.constant 0 : i32
    %c0_i32_1 = arith.constant 0 : i32
    return %c0_i32, %c0_i32_0 : i32, i32
  }
}

</mosaic_0001>

<bundles_post_ra>
// kernel: tpu_custom_call.1
= control target key start
LH: loop header
LB: loop body
LE: loop exit
PB: predicated region body
PF: predicated region fallthrough
CT: control target
= control target key end

     0   :  { %7 = vsyncpa [#allocation10], 0  ;;  %s3594_s9 = smov 0   ;;  %s3596_s10 = smov 0   ;;  %s4353_s0 = inlined_call_operand.vmem [shape: s32[48,1], index: 0, kind: input, shape index: {}]   ;;  %s4354_s1 = inlined_call_operand.vmem [shape: f32[48,128], index: 1, kind: input, shape index: {}]   ;;  %s4355_s2 = inlined_call_operand.hbm [shape: f32[1,1], index: 2, kind: output, shape index: {}]  }
   0x1   :  { %s3598_s11 = smov 0   ;;  %s3600_s12 = smov 0  }
   0x2   :  { %s3602_s13 = smov 0  }
   0x3 LB: > { %s2503_s14 = sadd.s32 4294967295, %s3571_s13   ;;  %s22_s15 = sadd.s32 1, %s3563_s11  ;;  %s3571_s13 = sphi %s3602_s13, %s13_s13   ;;  %s3567_s12 = sphi %s3600_s12, %s4362_s12   ;;  %s3563_s11 = sphi %s3598_s11, %s4361_s11   ;;  %s3559_s10 = sphi %s3596_s10, %s4360_s10   ;;  %s3555_s9 = sphi %s3594_s9, %s4359_s9  }
   0x4   : > { %p23_p0 = scmp.ge.s32.totalorder %s22_s15, 3  ;;  %s25_s16 = sadd.s32 1, %s3567_s12 }
   0x5   : > { %p2506_p1 = scmp.ge.s32.totalorder %s3571_s13, 1  ;;  %p132_p2 = scmp.lt.s32.totalorder %s3571_s13, 7 }
   0x6   : > { %s4364_s15 = smov (%p23_p0, %s22_s15), 0  ;;  %s4366_s16 = smov (!%p23_p0, %s25_s16), %s3567_s12 }
   0x7   : > { %p133_p3 = pnand %p2506_p1, %p132_p2  ;;  %p27_p4 = scmp.ge.s32.totalorder %s4366_s16, 2 }
   0x8   : > { %s2507_s17 = sshll.u32 (!%p133_p3), %s3555_s9, 1  ;;  %v3573_v0 = vmov (!%p133_p3), 0   ;;  %p180_p6 = scmp.eq.s32.totalorder (!%p133_p3), %s3559_s10, 0  ;;  %v170_v5 = vlaneseq (!%p133_p3) }
   0x9   : > { %s4368_s16 = smov (%p27_p4, %s4366_s16), 0  ;;  %136 = sbr.rel (%p133_p3) target bundleno = 1309 (0x51d), region = 28 }
   0xa   : > { %3483 = vset.pattern.permute.xlu0 (!%p133_p3), %v3573_v0  ;;  %p155_p5 = scmp.lt.s32.totalorder (!%p133_p3), %s2507_s17, 5  ;;  %p181_p7 = scmp.eq.s32.totalorder (!%p133_p3), %s3555_s9, 0  ;;  %v3643_v6 = vand.u32 (!%p133_p3), 127, %v170_v5 }
   0xc   : > { %p182_p8 = pnand (!%p133_p3), %p181_p7, %p180_p6 }
  0x10   : > { %s4370_s17 = smov (!%p155_p5, %s2507_s17), 5  ;;  %vm186_vm2 = vcmask (!%p182_p8), 64512   ;;  %vm203_vm3 = vcmask (!%p182_p8), 57344   ;;  %vm207_vm4 = vcmask (!%p182_p8), 0   ;;  %v3574_v9 = vmov (!%p182_p8), 0.0  }
  0x11   : > { %s2508_s18 = sshll.u32 %s4370_s17, 3  ;;  %187 = vst.msk [vmem:[#allocation2] sm:$0xff] (!%p182_p8), %vm186_vm2, %v3574_v9  ;;  %188 = vst.msk [vmem:[#allocation2 + $0x8] sm:$0xff] (!%p182_p8), %vm186_vm2, %v3574_v9 }
  0x12   : > { %s158_s21 = scalar_lea.vmem %s4353_s0, %s2508_s18  ;;  %s164_s24 = scalar_lea.vmem %s4354_s1, %s2508_s18  ;;  %189 = vst.msk [vmem:[#allocation2 + $0x10] sm:$0xff] (!%p182_p8), %vm186_vm2, %v3574_v9  ;;  %190 = vst.msk [vmem:[#allocation2 + $0x18] sm:$0xff] (!%p182_p8), %vm186_vm2, %v3574_v9 }
  0x13   : > { %v3636_v1 = vld [vmem:[%s164_s24] sm:$0xff]  ;;  %v3638_v2 = vld [vmem:[%s164_s24 + $0x8] sm:$0xff]  ;;  %191 = vst.msk [vmem:[#allocation2 + $0x20] sm:$0xff] (!%p182_p8), %vm186_vm2, %v3574_v9  ;;  %192 = vst.msk [vmem:[#allocation2 + $0x28] sm:$0xff] (!%p182_p8), %vm186_vm2, %v3574_v9 }
  0x14   : > { %v168_v3 = vld [vmem:[%s158_s21] sm:$0xff]  ;;  %v169_v4 = vld [vmem:[%s158_s21 + $0x8] sm:$0xff]  ;;  %193 = vst.msk [vmem:[#allocation2 + $0x30] sm:$0xff] (!%p182_p8), %vm186_vm2, %v3574_v9  ;;  %194 = vst.msk [vmem:[#allocation2 + $0x38] sm:$0xff] (!%p182_p8), %vm186_vm2, %v3574_v9 }
  0x15   : > { %173 = vperm.xlu0 %3483, %v168_v3   ;;  %195 = vst.msk [vmem:[#allocation2 + $0x40] sm:$0xff] (!%p182_p8), %vm186_vm2, %v3574_v9  ;;  %196 = vst.msk [vmem:[#allocation2 + $0x48] sm:$0xff] (!%p182_p8), %vm186_vm2, %v3574_v9 }
  0x16   : > { %197 = vst.msk [vmem:[#allocation2 + $0x50] sm:$0xff] (!%p182_p8), %vm186_vm2, %v3574_v9  ;;  %198 = vst.msk [vmem:[#allocation2 + $0x58] sm:$0xff] (!%p182_p8), %vm186_vm2, %v3574_v9 }
  0x17   : > { %199 = vst.msk [vmem:[#allocation2 + $0x60] sm:$0xff] (!%p182_p8), %vm186_vm2, %v3574_v9  ;;  %200 = vst.msk [vmem:[#allocation2 + $0x68] sm:$0xff] (!%p182_p8), %vm186_vm2, %v3574_v9 }
  0x18   : > { %201 = vst.msk [vmem:[#allocation2 + $0x70] sm:$0xff] (!%p182_p8), %vm186_vm2, %v3574_v9  ;;  %202 = vst.msk [vmem:[#allocation2 + $0x78] sm:$0xff] (!%p182_p8), %vm186_vm2, %v3574_v9 }
  0x19   : > { %176 = vperm.xlu0 %3483, %v169_v4   ;;  %205 = vst [vmem:[#allocation4] sm:$0x1] (!%p182_p8), %v3574_v9  ;;  %206 = vst [vmem:[#allocation5] sm:$0x1] (!%p182_p8), %v3574_v9 }
  0x1a   : > { %204 = vst.msk [vmem:[#allocation3] sm:$0x1] (!%p182_p8), %vm203_vm3, %v3574_v9 }
  0x1b   : > { %208 = vst.msk [vmem:[#allocation7] sm:$0x1] (!%p182_p8), %vm207_vm4, %v3574_v9  ;;  %209 = vst.msk [vmem:[#allocation8] sm:$0x1] (!%p182_p8), %vm207_vm4, %v3574_v9 }
  0x93   : > { %185 = sbr.rel (%p182_p8) target bundleno = 154 (0x9a), region = 32 }
  0x94   : > { %v3645_v7 = vpop.permute.xlu0 %173 }
  0x95   : > { %vm178_vm0 = vcmp.eq.s32.totalorder %v3643_v6, %v3645_v7 }
  0x98   : > { %v3649_v8 = vpop.permute.xlu0 %176 }
  0x99   : > { %vm179_vm1 = vcmp.eq.s32.totalorder %v3643_v6, %v3649_v8 }
  0x9a PF: > { %p2511_p9 = scmp.ne.s32.totalorder %s3559_s10, 0 }
  0x9b   : > { %233 = vxpose.xlu0.b32.start [1/2] (short) (!%p2511_p9), %v3636_v1, 128  ;;  %vm3681_vm5 = vmpackc.low (!%p2511_p9), %vm179_vm1, %vm178_vm0  ;;  %v3575_v11 = vmov (!%p2511_p9), 1.0|1.0   ;;  %v3576_v12 = vmov (!%p2511_p9), 0.0   ;;  %vm1434_vm6 = vcmask (!%p2511_p9), 64512   ;;  %v1451_v33 = vld [vmem:[#allocation3] sm:$0x1] (!%p2511_p9)  ;;  %v1475_v10 = vmul.f32 (!%p2511_p9), %v3636_v1, %v3636_v1 }
  0x9c   : > { %212 = sbr.rel (%p2511_p9) target bundleno = 785 (0x311), region = 36  ;;  %3138 = vmatprep.subr.msk.bf16.mxu0 (!%p2511_p9), %vm3681_vm5, %v3575_v11  ;;  %3126 = vmatprep.subr.msk.bf16.mxu1 (!%p2511_p9), %vm3681_vm5, %v3575_v11  ;;  %v2512_v13 = vsel (!%p2511_p9), %vm178_vm0, 1.0, %v3576_v12  ;;  %v2513_v14 = vsel (!%p2511_p9), %vm179_vm1, 1.0, %v3576_v12  ;;  %vm1462_vm7 = vcmask (!%p2511_p9), 57344   ;;  %vm265_vm8 = vcmask (!%p2511_p9), 130048   ;;  %p2520_p10 = scmp.ne.s32.totalorder (!%p2511_p9), %s3555_s9, 2 }
  0x9d   : > { %3140 = vmatpush3.bf16.msk.msra.mxu0 (!%p2511_p9), %vm3681_vm5, %v3575_v11  ;;  %3128 = vmatpush3.bf16.msk.msra.mxu1 (!%p2511_p9), %vm3681_vm5, %v3575_v11  ;;  %v543_v15 = vsub.f32 (!%p2511_p9), %v2512_v13, %v2512_v13  ;;  %v550_v16 = vsub.f32 (!%p2511_p9), %v2513_v14, %v2513_v14  ;;  %v1452_v17 = vsel (!%p2511_p9), %vm1434_vm6, %v2512_v13, 0.0  ;;  %v1453_v18 = vsel (!%p2511_p9), %vm1434_vm6, %v2513_v14, 0.0 }
  0x9e   : > { %v1454_v19 = vadd.f32 (!%p2511_p9), %v1453_v18, %v1452_v17 }
  0x9f   : > { %234 = vxpose.xlu0.b32.end [2/2] (short) (!%p2511_p9), %v3638_v2, 128  ;;  %v544_v20 = vand.u32 (!%p2511_p9), 4294901760, %v543_v15  ;;  %v551_v21 = vand.u32 (!%p2511_p9), 4294901760, %v550_v16  ;;  %v3705_v36 = vpack.c.bf16 (!%p2511_p9), %v550_v16, %v543_v15 }
  0xa0   : > { %v1455_v22 = vrot.slane (!%p2511_p9), %v1454_v19, 4 }
  0xa1   : > { %v545_v23 = vsub.f32 (!%p2511_p9), %v543_v15, %v544_v20  ;;  %v552_v24 = vsub.f32 (!%p2511_p9), %v550_v16, %v551_v21  ;;  %v3141_v25 = vpack.c.bf16 (!%p2511_p9), %v551_v21, %v544_v20 }
  0xa2   : > { %v1456_v26 = vadd.f32 (!%p2511_p9), %v1455_v22, %v1454_v19 }
  0xa3   : > { %v546_v27 = vand.u32 4294901760, %v545_v23  ;;  %v553_v28 = vand.u32 4294901760, %v552_v24  ;;  %3142 = vmatprep.subr.bf16.mxu0 %v3141_v25  ;;  %vm1625_vm9 = vcmask (!%p2520_p10), 1040384   ;;  %vm1629_vm10 = vcmask (!%p2520_p10), 0  }
  0xa4   : > { %v1457_v29 = vrot.slane %v1456_v26, 2 }
  0xa5   : > { %v3129_v30 = vpack.c.bf16 %v553_v28, %v546_v27 }
  0xa6   : > { %v1458_v31 = vadd.f32 %v1457_v29, %v1456_v26 }
  0xa7   : > { %3130 = vmatprep.subr.bf16.mxu1 %v3129_v30 }
  0xa8   : > { %v1459_v32 = vrot.slane %v1458_v31, 1 }
  0xaa   : > { %v1460_v34 = vadd.f32 %v1459_v32, %v1458_v31 }
  0xac   : > { %v1461_v35 = vadd.f32 %v1460_v34, %v1451_v33 }
  0xae   : > { %1463 = vst.msk [vmem:[#allocation3] sm:$0x1] %vm1462_vm7, %v1461_v35 }
 0x11b   : > { %v249_v37 = vpop.trf.xlu0 }
 0x11c   : > { %v267_v38 = vsel %vm265_vm8, %v249_v37, 0 }
 0x11d   : > { %v3708_v39 = vand.u32 4294901760, %v267_v38 }
 0x11f   : > { %v3711_v40 = vsub.f32 %v267_v38, %v3708_v39  ;;  %v250_v41 = vpop.trf.xlu0 }
 0x120   : > { %v270_v42 = vsel %vm265_vm8, %v250_v41, 0 }
 0x121   : > { %v3714_v43 = vand.u32 4294901760, %v270_v42  ;;  %v383_v44 = vand.u32 4294901760, %v3711_v40 }
 0x123   : > { %v3718_v45 = vsub.f32 %v270_v42, %v3714_v43  ;;  %v251_v46 = vpop.trf.xlu0  ;;  %2835 = vmatprep.mubr.f32.mxu0 %v383_v44  ;;  %v384_v47 = vsub.f32 %v3711_v40, %v383_v44 }
 0x124   : > { %v273_v48 = vsel %vm265_vm8, %v251_v46, 0 }
 0x125   : > { %v3722_v49 = vand.u32 4294901760, %v273_v48  ;;  %v385_v50 = vand.u32 4294901760, %v384_v47  ;;  %v393_v51 = vand.u32 4294901760, %v3718_v45 }
 0x127   : > { %v3726_v52 = vsub.f32 %v273_v48, %v3722_v49  ;;  %v252_v53 = vpop.trf.xlu0  ;;  %2751 = vmatprep.mubr.f32.mxu1 %v385_v50  ;;  %2836 = vmatmul.mubr.f32.vlgmr.msra.gmra.mrb[0].mxu0 %v393_v51  ;;  %v394_v54 = vsub.f32 %v3718_v45, %v393_v51 }
 0x128   : > { %v276_v55 = vsel %vm265_vm8, %v252_v53, 0  ;;  %3144 = vmatpush3.bf16.msra.mxu0 %v3141_v25 }
 0x129   : > { %v3730_v56 = vand.u32 4294901760, %v276_v55  ;;  %v395_v57 = vand.u32 4294901760, %v394_v54  ;;  %v403_v58 = vand.u32 4294901760, %v3726_v52  ;;  %3146 = vmatprep.subr.msk.bf16.mxu0 %vm3681_vm5, %v3575_v11 }
 0x12b   : > { %v3737_v59 = vsub.f32 %v276_v55, %v3730_v56  ;;  %v253_v60 = vpop.trf.xlu0  ;;  %2752 = vmatmul.mubr.f32.vlgmr.msra.gmra.mrb[0].mxu1 %v395_v57  ;;  %2838 = vmatprep.mubr.f32.mxu0 %v403_v58  ;;  %v404_v61 = vsub.f32 %v3726_v52, %v403_v58 }
 0x12c   : > { %v279_v62 = vsel %vm265_vm8, %v253_v60, 0  ;;  %3132 = vmatpush3.bf16.msra.mxu1 %v3129_v30 }
 0x12d   : > { %v3741_v63 = vand.u32 4294901760, %v279_v62  ;;  %v405_v0 = vand.u32 4294901760, %v404_v61  ;;  %v413_v3 = vand.u32 4294901760, %v3737_v59  ;;  %3134 = vmatprep.subr.bf16.mxu1 %v3705_v36 }
 0x12f   : > { %v3746_v4 = vsub.f32 %v279_v62, %v3741_v63  ;;  %v254_v9 = vpop.trf.xlu0  ;;  %2754 = vmatprep.mubr.f32.mxu1 %v405_v0  ;;  %2839 = vmatmul.mubr.f32.gmra.mrb[2].mxu0 %v413_v3  ;;  %v414_v12 = vsub.f32 %v3737_v59, %v413_v3 }
 0x130   : > { %v282_v13 = vsel %vm265_vm8, %v254_v9, 0 }
 0x131   : > { %v3750_v14 = vand.u32 4294901760, %v282_v13  ;;  %v415_v15 = vand.u32 4294901760, %v414_v12  ;;  %v423_v16 = vand.u32 4294901760, %v3746_v4 }
 0x133   : > { %v3754_v17 = vsub.f32 %v282_v13, %v3750_v14  ;;  %v255_v18 = vpop.trf.xlu0  ;;  %2755 = vmatmul.mubr.f32.gmra.mrb[2].mxu1 %v415_v15  ;;  %2841 = vmatprep.mubr.f32.mxu0 %v423_v16  ;;  %v424_v19 = vsub.f32 %v3746_v4, %v423_v16 }
 0x134   : > { %v285_v20 = vsel %vm265_vm8, %v255_v18, 0 }
 0x135   : > { %v3758_v21 = vand.u32 4294901760, %v285_v20  ;;  %v425_v22 = vand.u32 4294901760, %v424_v19  ;;  %v433_v23 = vand.u32 4294901760, %v3754_v17 }
 0x137   : > { %v3762_v24 = vsub.f32 %v285_v20, %v3758_v21  ;;  %v256_v25 = vpop.trf.xlu0  ;;  %2757 = vmatprep.mubr.f32.mxu1 %v425_v22  ;;  %2842 = vmatmul.mubr.f32.gmra.mrb[4].mxu0 %v433_v23  ;;  %v434_v26 = vsub.f32 %v3754_v17, %v433_v23 }
 0x138   : > { %v288_v27 = vsel %vm265_vm8, %v256_v25, 0 }
 0x139   : > { %v3766_v28 = vand.u32 4294901760, %v288_v27  ;;  %v435_v29 = vand.u32 4294901760, %v434_v26  ;;  %v443_v30 = vand.u32 4294901760, %v3762_v24 }
 0x13b   : > { %v3770_v31 = vsub.f32 %v288_v27, %v3766_v28  ;;  %v257_v32 = vpop.trf.xlu0  ;;  %2758 = vmatmul.mubr.f32.gmra.mrb[4].mxu1 %v435_v29  ;;  %2844 = vmatprep.mubr.f32.mxu0 %v443_v30  ;;  %v444_v33 = vsub.f32 %v3762_v24, %v443_v30 }
 0x13c   : > { %v291_v34 = vsel %vm265_vm8, %v257_v32, 0 }
 0x13d   : > { %v3774_v35 = vand.u32 4294901760, %v291_v34  ;;  %v445_v37 = vand.u32 4294901760, %v444_v33  ;;  %v453_v38 = vand.u32 4294901760, %v3770_v31 }
 0x13f   : > { %v3778_v41 = vsub.f32 %v291_v34, %v3774_v35  ;;  %v258_v42 = vpop.trf.xlu0  ;;  %2760 = vmatprep.mubr.f32.mxu1 %v445_v37  ;;  %2845 = vmatmul.mubr.f32.gmra.mrb[6].mxu0 %v453_v38  ;;  %v454_v44 = vsub.f32 %v3770_v31, %v453_v38 }
 0x140   : > { %v294_v46 = vsel %vm265_vm8, %v258_v42, 0 }
 0x141   : > { %v3782_v47 = vand.u32 4294901760, %v294_v46  ;;  %v455_v48 = vand.u32 4294901760, %v454_v44  ;;  %v463_v50 = vand.u32 4294901760, %v3778_v41 }
 0x143   : > { %v3786_v51 = vsub.f32 %v294_v46, %v3782_v47  ;;  %v259_v53 = vpop.trf.xlu0  ;;  %2761 = vmatmul.mubr.f32.gmra.mrb[6].mxu1 %v455_v48  ;;  %2847 = vmatprep.mubr.f32.mxu0 %v463_v50  ;;  %v464_v54 = vsub.f32 %v3778_v41, %v463_v50 }
 0x144   : > { %v297_v55 = vsel %vm265_vm8, %v259_v53, 0 }
 0x145   : > { %v3790_v57 = vand.u32 4294901760, %v297_v55  ;;  %v465_v58 = vand.u32 4294901760, %v464_v54  ;;  %v473_v60 = vand.u32 4294901760, %v3786_v51 }
 0x147   : > { %v3794_v61 = vsub.f32 %v297_v55, %v3790_v57  ;;  %v260_v62 = vpop.trf.xlu0  ;;  %2763 = vmatprep.mubr.f32.mxu1 %v465_v58  ;;  %2848 = vmatmul.mubr.f32.gmra.mrb[8].mxu0 %v473_v60  ;;  %v474_v0 = vsub.f32 %v3786_v51, %v473_v60 }
 0x148   : > { %v300_v3 = vsel %vm265_vm8, %v260_v62, 0 }
 0x149   : > { %v3798_v9 = vand.u32 4294901760, %v300_v3  ;;  %v475_v12 = vand.u32 4294901760, %v474_v0  ;;  %v483_v13 = vand.u32 4294901760, %v3794_v61 }
 0x14b   : > { %v3802_v15 = vsub.f32 %v300_v3, %v3798_v9  ;;  %v261_v16 = vpop.trf.xlu0  ;;  %2764 = vmatmul.mubr.f32.gmra.mrb[8].mxu1 %v475_v12  ;;  %2850 = vmatprep.mubr.f32.mxu0 %v483_v13  ;;  %v484_v18 = vsub.f32 %v3794_v61, %v483_v13 }
 0x14c   : > { %v303_v19 = vsel %vm265_vm8, %v261_v16, 0 }
 0x14d   : > { %v3806_v20 = vand.u32 4294901760, %v303_v19  ;;  %v485_v22 = vand.u32 4294901760, %v484_v18  ;;  %v493_v23 = vand.u32 4294901760, %v3802_v15 }
 0x14f   : > { %v3810_v25 = vsub.f32 %v303_v19, %v3806_v20  ;;  %v262_v26 = vpop.trf.xlu0  ;;  %2766 = vmatprep.mubr.f32.mxu1 %v485_v22  ;;  %2851 = vmatmul.mubr.f32.gmra.mrb[10].mxu0 %v493_v23  ;;  %v494_v27 = vsub.f32 %v3802_v15, %v493_v23 }
 0x150   : > { %v306_v29 = vsel %vm265_vm8, %v262_v26, 0  ;;  %v216_v26 = vld [vmem:[#allocation2 + $0x18] sm:$0xff] }
 0x151   : > { %v3814_v30 = vand.u32 4294901760, %v306_v29  ;;  %v495_v32 = vand.u32 4294901760, %v494_v27  ;;  %v503_v33 = vand.u32 4294901760, %v3810_v25 }
 0x153   : > { %v3818_v34 = vsub.f32 %v306_v29, %v3814_v30  ;;  %v263_v37 = vpop.trf.xlu0  ;;  %2767 = vmatmul.mubr.f32.gmra.mrb[10].mxu1 %v495_v32  ;;  %2853 = vmatprep.mubr.f32.mxu0 %v503_v33  ;;  %v504_v38 = vsub.f32 %v3810_v25, %v503_v33  ;;  %v215_v32 = vld [vmem:[#allocation2 + $0x10] sm:$0xff] }
 0x154   : > { %v309_v42 = vsel %vm265_vm8, %v263_v37, 0 }
 0x155   : > { %v3822_v44 = vand.u32 4294901760, %v309_v42  ;;  %v505_v46 = vand.u32 4294901760, %v504_v38  ;;  %v513_v48 = vand.u32 4294901760, %v3818_v34 }
 0x157   : > { %v3826_v50 = vsub.f32 %v309_v42, %v3822_v44  ;;  %v264_v53 = vpop.trf.xlu0  ;;  %2769 = vmatprep.mubr.f32.mxu1 %v505_v46  ;;  %2854 = vmatmul.mubr.f32.gmra.mrb[12].mxu0 %v513_v48  ;;  %v514_v54 = vsub.f32 %v3818_v34, %v513_v48 }
 0x158   : > { %v312_v55 = vsel %vm265_vm8, %v264_v53, 0  ;;  %v217_v53 = vld [vmem:[#allocation2 + $0x20] sm:$0xff] }
 0x159   : > { %v3830_v58 = vand.u32 4294901760, %v312_v55  ;;  %v515_v60 = vand.u32 4294901760, %v514_v54  ;;  %v523_v62 = vand.u32 4294901760, %v3826_v50 }
 0x15b   : > { %v3834_v0 = vsub.f32 %v312_v55, %v3830_v58  ;;  %2770 = vmatmul.mubr.f32.gmra.mrb[12].mxu1 %v515_v60  ;;  %2856 = vmatprep.mubr.f32.mxu0 %v523_v62  ;;  %v524_v3 = vsub.f32 %v3826_v50, %v523_v62 }
 0x15d   : > { %v525_v12 = vand.u32 4294901760, %v524_v3  ;;  %v533_v13 = vand.u32 4294901760, %v3834_v0 }
 0x15f   : > { %2772 = vmatprep.mubr.f32.mxu1 %v525_v12  ;;  %2857 = vmatmul.mubr.f32.gmra.mrb[14].mxu0 %v533_v13  ;;  %v534_v16 = vsub.f32 %v3834_v0, %v533_v13 }
 0x160   : > { %2863 = vmatprep.mubr.f32.mxu0 %v3708_v39 }
 0x161   : > { %v535_v18 = vand.u32 4294901760, %v534_v16  ;;  %v219_v16 = vld [vmem:[#allocation2 + $0x30] sm:$0xff] }
 0x163   : > { %2773 = vmatmul.mubr.f32.gmra.mrb[14].mxu1 %v535_v18  ;;  %2864 = vmatmul.mubr.f32.vlgmr.msra.gmra.mrb[0].mxu0 %v3714_v43 }
 0x164   : > { %2779 = vmatprep.mubr.f32.mxu1 %v3708_v39  ;;  %2866 = vmatprep.mubr.f32.mxu0 %v3722_v49 }
 0x165   : > { %3148 = vmatpush3.bf16.msk.msra.mxu0 %vm3681_vm5, %v3575_v11  ;;  %v1476_v11 = vmul.f32 %v3638_v2, %v3638_v2 }
 0x167   : > { %2780 = vmatmul.mubr.f32.vlgmr.msra.gmra.mrb[0].mxu1 %v3714_v43  ;;  %2867 = vmatmul.mubr.f32.gmra.mrb[2].mxu0 %v3730_v56 }
 0x168   : > { %3136 = vmatpush3.bf16.msra.mxu1 %v3705_v36  ;;  %2782 = vmatprep.mubr.f32.mxu1 %v3722_v49  ;;  %v1465_v36 = vadd.f32 %v3638_v2, %v3636_v1 }
 0x169   : > { %2869 = vmatprep.mubr.f32.mxu0 %v3741_v63 }
 0x16b   : > { %2783 = vmatmul.mubr.f32.gmra.mrb[2].mxu1 %v3730_v56  ;;  %2870 = vmatmul.mubr.f32.gmra.mrb[4].mxu0 %v3750_v14 }
 0x16c   : > { %2785 = vmatprep.mubr.f32.mxu1 %v3741_v63  ;;  %2872 = vmatprep.mubr.f32.mxu0 %v3758_v21 }
 0x16f   : > { %2786 = vmatmul.mubr.f32.gmra.mrb[4].mxu1 %v3750_v14  ;;  %2873 = vmatmul.mubr.f32.gmra.mrb[6].mxu0 %v3766_v28 }
 0x170   : > { %2788 = vmatprep.mubr.f32.mxu1 %v3758_v21  ;;  %2875 = vmatprep.mubr.f32.mxu0 %v3774_v35 }
 0x173   : > { %2789 = vmatmul.mubr.f32.gmra.mrb[6].mxu1 %v3766_v28  ;;  %2876 = vmatmul.mubr.f32.gmra.mrb[8].mxu0 %v3782_v47 }
 0x174   : > { %2791 = vmatprep.mubr.f32.mxu1 %v3774_v35  ;;  %2878 = vmatprep.mubr.f32.mxu0 %v3790_v57 }
 0x177   : > { %2792 = vmatmul.mubr.f32.gmra.mrb[8].mxu1 %v3782_v47  ;;  %2879 = vmatmul.mubr.f32.gmra.mrb[10].mxu0 %v3798_v9 }
 0x178   : > { %2794 = vmatprep.mubr.f32.mxu1 %v3790_v57  ;;  %2881 = vmatprep.mubr.f32.mxu0 %v3806_v20 }
 0x17b   : > { %2795 = vmatmul.mubr.f32.gmra.mrb[10].mxu1 %v3798_v9  ;;  %2882 = vmatmul.mubr.f32.gmra.mrb[12].mxu0 %v3814_v30 }
 0x17c   : > { %2797 = vmatprep.mubr.f32.mxu1 %v3806_v20  ;;  %2884 = vmatprep.mubr.f32.mxu0 %v3822_v44 }
 0x17f   : > { %2798 = vmatmul.mubr.f32.gmra.mrb[12].mxu1 %v3814_v30  ;;  %2885 = vmatmul.mubr.f32.gmra.mrb[14].mxu0 %v3830_v58 }
 0x180   : > { %2800 = vmatprep.mubr.f32.mxu1 %v3822_v44  ;;  %2891 = vmatprep.mubr.f32.mxu0 %v3708_v39  ;;  %v1477_v39 = vadd.f32 %v1476_v11, %v1475_v10 }
 0x183   : > { %2801 = vmatmul.mubr.f32.gmra.mrb[14].mxu1 %v3830_v58  ;;  %2892 = vmatmul.mubr.f32.vlgmr.msra.gmra.mrb[0].mxu0 %v3714_v43  ;;  %v1478_v43 = vrot.slane %v1477_v39, 4 }
 0x184   : > { %2807 = vmatprep.mubr.f32.mxu1 %v3711_v40  ;;  %2894 = vmatprep.mubr.f32.mxu0 %v3722_v49  ;;  %v1466_v40 = vrot.slane %v1465_v36, 4 }
 0x185   : > { %v1479_v49 = vadd.f32 %v1478_v43, %v1477_v39 }
 0x187   : > { %2808 = vmatmul.mubr.f32.vlgmr.msra.gmra.mrb[0].mxu1 %v3718_v45  ;;  %2895 = vmatmul.mubr.f32.gmra.mrb[2].mxu0 %v3730_v56  ;;  %v1467_v45 = vadd.f32 %v1466_v40, %v1465_v36  ;;  %v1480_v56 = vrot.slane %v1479_v49, 2  ;;  %v222_v40 = vld [vmem:[#allocation2 + $0x48] sm:$0xff] }
 0x188   : > { %2810 = vmatprep.mubr.f32.mxu1 %v3726_v52  ;;  %2897 = vmatprep.mubr.f32.mxu0 %v3741_v63 }
 0x189   : > { %v1468_v52 = vrot.slane %v1467_v45, 2  ;;  %v1481_v63 = vadd.f32 %v1480_v56, %v1479_v49 }
 0x18b   : > { %2811 = vmatmul.mubr.f32.gmra.mrb[2].mxu1 %v3737_v59  ;;  %2898 = vmatmul.mubr.f32.gmra.mrb[4].mxu0 %v3750_v14  ;;  %v1469_v59 = vadd.f32 %v1468_v52, %v1467_v45  ;;  %v1482_v14 = vrot.slane %v1481_v63, 1  ;;  %v221_v52 = vld [vmem:[#allocation2 + $0x40] sm:$0xff] }
 0x18c   : > { %2813 = vmatprep.mubr.f32.mxu1 %v3746_v4  ;;  %2900 = vmatprep.mubr.f32.mxu0 %v3758_v21 }
 0x18d   : > { %v1470_v4 = vrot.slane %v1469_v59, 1  ;;  %v1483_v21 = vadd.f32 %v1482_v14, %v1481_v63 }
 0x18f   : > { %2814 = vmatmul.mubr.f32.gmra.mrb[4].mxu1 %v3754_v17  ;;  %2901 = vmatmul.mubr.f32.gmra.mrb[6].mxu0 %v3766_v28  ;;  %v1471_v17 = vadd.f32 %v1470_v4, %v1469_v59  ;;  %v1474_v28 = vld [vmem:[#allocation5] sm:$0x1] }
 0x190   : > { %2816 = vmatprep.mubr.f32.mxu1 %v3762_v24  ;;  %2903 = vmatprep.mubr.f32.mxu0 %v3774_v35  ;;  %v1464_v24 = vld [vmem:[#allocation4] sm:$0x1]  ;;  %v1484_v35 = vadd.f32 %v1483_v21, %v1474_v28 }
 0x192   : > { %1485 = vst [vmem:[#allocation5] sm:$0x1] %v1484_v35 }
 0x193   : > { %2817 = vmatmul.mubr.f32.gmra.mrb[6].mxu1 %v3770_v31  ;;  %2904 = vmatmul.mubr.f32.gmra.mrb[8].mxu0 %v3782_v47  ;;  %v1472_v31 = vadd.f32 %v1471_v17, %v1464_v24  ;;  %v224_v17 = vld [vmem:[#allocation2 + $0x58] sm:$0xff] }
 0x194   : > { %2819 = vmatprep.mubr.f32.mxu1 %v3778_v41  ;;  %2906 = vmatprep.mubr.f32.mxu0 %v3790_v57 }
 0x195   : > { %1473 = vst [vmem:[#allocation4] sm:$0x1] %v1472_v31  ;;  %v223_v31 = vld [vmem:[#allocation2 + $0x50] sm:$0xff] }
 0x197   : > { %2820 = vmatmul.mubr.f32.gmra.mrb[8].mxu1 %v3786_v51  ;;  %2907 = vmatmul.mubr.f32.gmra.mrb[10].mxu0 %v3798_v9  ;;  %v214_v51 = vld [vmem:[#allocation2 + $0x8] sm:$0xff] }
 0x198   : > { %2822 = vmatprep.mubr.f32.mxu1 %v3794_v61  ;;  %2909 = vmatprep.mubr.f32.mxu0 %v3806_v20 }
 0x19b   : > { %2823 = vmatmul.mubr.f32.gmra.mrb[10].mxu1 %v3802_v15  ;;  %2910 = vmatmul.mubr.f32.gmra.mrb[12].mxu0 %v3814_v30  ;;  %v213_v15 = vld [vmem:[#allocation2] sm:$0xff] }
 0x19c   : > { %2825 = vmatprep.mubr.f32.mxu1 %v3810_v25  ;;  %2912 = vmatprep.mubr.f32.mxu0 %v3822_v44  ;;  %v218_v44 = vld [vmem:[#allocation2 + $0x28] sm:$0xff] }
 0x19f   : > { %2826 = vmatmul.mubr.f32.gmra.mrb[12].mxu1 %v3818_v34  ;;  %2913 = vmatmul.mubr.f32.gmra.mrb[14].mxu0 %v3830_v58 }
 0x1a0   : > { %2828 = vmatprep.mubr.f32.mxu1 %v3826_v50 }
 0x1a3   : > { %2829 = vmatmul.mubr.f32.gmra.mrb[14].mxu1 %v3834_v0  ;;  %v220_v0 = vld [vmem:[#allocation2 + $0x38] sm:$0xff] }
 0x256   : > { %v2893_v41 = vpop.f32.mrb[0].mxu0 }
 0x257   : > { %v1324_v47 = vpop.f32.mrb[1].mxu0 }
 0x25a   : > { %v2809_v57 = vpop.f32.mrb[0].mxu1  ;;  %v2896_v61 = vpop.f32.mrb[2].mxu0 }
 0x25b   : > { %v3341_v9 = vadd.f32 %v2893_v41, %v2809_v57  ;;  %v784_v19 = vpop.f32.mrb[1].mxu1  ;;  %v1336_v20 = vpop.f32.mrb[3].mxu0 }
 0x25c   : > { %v3342_v22 = vadd.f32 %v1324_v47, %v784_v19 }
 0x25d   : > { %v1419_v23 = vadd.f32 %v3341_v9, %v214_v51 }
 0x25e   : > { %v1418_v25 = vadd.f32 %v3342_v22, %v213_v15  ;;  %v2812_v27 = vpop.f32.mrb[2].mxu1  ;;  %v2899_v29 = vpop.f32.mrb[4].mxu0 }
 0x25f   : > { %1436 = vst.msk [vmem:[#allocation2 + $0x8] sm:$0xff] %vm1434_vm6, %v1419_v23  ;;  %v3343_v30 = vadd.f32 %v2896_v61, %v2812_v27  ;;  %v798_v33 = vpop.f32.mrb[3].mxu1  ;;  %v1348_v34 = vpop.f32.mrb[5].mxu0  ;;  %v226_v61 = vld [vmem:[#allocation2 + $0x68] sm:$0xff] }
 0x260   : > { %1435 = vst.msk [vmem:[#allocation2] sm:$0xff] %vm1434_vm6, %v1418_v25  ;;  %v3344_v37 = vadd.f32 %v1336_v20, %v798_v33  ;;  %v225_v20 = vld [vmem:[#allocation2 + $0x60] sm:$0xff]  ;;  %v227_v33 = vld [vmem:[#allocation2 + $0x70] sm:$0xff] }
 0x261   : > { %v1421_v38 = vadd.f32 %v3343_v30, %v216_v26 }
 0x262   : > { %v1420_v42 = vadd.f32 %v3344_v37, %v215_v32  ;;  %v2815_v46 = vpop.f32.mrb[4].mxu1  ;;  %v2902_v48 = vpop.f32.mrb[6].mxu0 }
 0x263   : > { %1438 = vst.msk [vmem:[#allocation2 + $0x18] sm:$0xff] %vm1434_vm6, %v1421_v38  ;;  %v3345_v50 = vadd.f32 %v2899_v29, %v2815_v46  ;;  %v812_v54 = vpop.f32.mrb[5].mxu1  ;;  %v1360_v55 = vpop.f32.mrb[7].mxu0  ;;  %v228_v29 = vld [vmem:[#allocation2 + $0x78] sm:$0xff] }
 0x264   : > { %1437 = vst.msk [vmem:[#allocation2 + $0x10] sm:$0xff] %vm1434_vm6, %v1420_v42  ;;  %v3346_v58 = vadd.f32 %v1348_v34, %v812_v54 }
 0x265   : > { %v1423_v60 = vadd.f32 %v3345_v50, %v218_v44  ;;  %v1490_v44 = vld [vmem:[#allocation3] sm:$0x1] (!%p2520_p10)  ;;  %v1619_v50 = vld [vmem:[#allocation5] sm:$0x1] (!%p2520_p10) }
 0x266   : > { %v1422_v62 = vadd.f32 %v3346_v58, %v217_v53  ;;  %v2818_v3 = vpop.f32.mrb[6].mxu1  ;;  %v2905_v12 = vpop.f32.mrb[8].mxu0  ;;  %v1491_v46 = vmax.f32 (!%p2520_p10), %v1490_v44, 1.0  ;;  %v1620_v54 = vmax.f32 (!%p2520_p10), %v1619_v50, 1e-12 }
 0x267   : > { %1440 = vst.msk [vmem:[#allocation2 + $0x28] sm:$0xff] %vm1434_vm6, %v1423_v60  ;;  %v3347_v13 = vadd.f32 %v2902_v48, %v2818_v3  ;;  %v826_v18 = vpop.f32.mrb[7].mxu1  ;;  %v1372_v10 = vpop.f32.mrb[9].mxu0  ;;  %v1511_v48 = vshrl.u32 (!%p2520_p10), %v170_v5, 7  ;;  %v1493_v58 = vld [vmem:[#allocation2] sm:$0xff] (!%p2520_p10)  ;;  %v1494_v60 = vld [vmem:[#allocation2 + $0x8] sm:$0xff] (!%p2520_p10) }
 0x268   : > { %1439 = vst.msk [vmem:[#allocation2 + $0x20] sm:$0xff] %vm1434_vm6, %v1422_v62  ;;  %v3348_v11 = vadd.f32 %v1360_v55, %v826_v18  ;;  %3484 = vrcp.f32 (!%p2520_p10), %v1491_v46 }
 0x269   : > { %v1425_v36 = vadd.f32 %v3347_v13, %v220_v0  ;;  %v1512_v53 = vsub.s32 (!%p2520_p10), 0, %v1511_v48  ;;  %3486 = vrsqrt.f32 (!%p2520_p10), %v1620_v54 }
 0x26a   : > { %v1424_v39 = vadd.f32 %v3348_v11, %v219_v16  ;;  %v2821_v43 = vpop.f32.mrb[8].mxu1  ;;  %v2908_v45 = vpop.f32.mrb[10].mxu0  ;;  %v1496_v3 = vld [vmem:[#allocation2 + $0x18] sm:$0xff] (!%p2520_p10) }
 0x26b   : > { %1442 = vst.msk [vmem:[#allocation2 + $0x38] sm:$0xff] %vm1434_vm6, %v1425_v36  ;;  %v3349_v49 = vadd.f32 %v2905_v12, %v2821_v43  ;;  %v840_v56 = vpop.f32.mrb[9].mxu1  ;;  %v1384_v59 = vpop.f32.mrb[11].mxu0  ;;  %v1495_v62 = vld [vmem:[#allocation2 + $0x10] sm:$0xff] (!%p2520_p10) }
 0x26c   : > { %1441 = vst.msk [vmem:[#allocation2 + $0x30] sm:$0xff] %vm1434_vm6, %v1424_v39  ;;  %v3350_v63 = vadd.f32 %v1372_v10, %v840_v56 }
 0x26d   : > { %v1427_v4 = vadd.f32 %v3349_v49, %v222_v40 }
 0x26e   : > { %v1426_v14 = vadd.f32 %v3350_v63, %v221_v52  ;;  %v2824_v21 = vpop.f32.mrb[10].mxu1  ;;  %v2911_v24 = vpop.f32.mrb[12].mxu0  ;;  %v1498_v10 = vld [vmem:[#allocation2 + $0x28] sm:$0xff] (!%p2520_p10) }
 0x26f   : > { %1444 = vst.msk [vmem:[#allocation2 + $0x48] sm:$0xff] %vm1434_vm6, %v1427_v4  ;;  %v3351_v28 = vadd.f32 %v2908_v45, %v2824_v21  ;;  %v854_v35 = vpop.f32.mrb[11].mxu1  ;;  %v1396_v41 = vpop.f32.mrb[13].mxu0  ;;  %v1497_v5 = vld [vmem:[#allocation2 + $0x20] sm:$0xff] (!%p2520_p10) }
 0x270   : > { %1443 = vst.msk [vmem:[#allocation2 + $0x40] sm:$0xff] %vm1434_vm6, %v1426_v14  ;;  %v3352_v47 = vadd.f32 %v1384_v59, %v854_v35 }
 0x271   : > { %v1429_v51 = vadd.f32 %v3351_v28, %v224_v17  ;;  %v1618_v28 = vld [vmem:[#allocation4] sm:$0x1] (!%p2520_p10) }
 0x272   : > { %v1428_v57 = vadd.f32 %v3352_v47, %v223_v31  ;;  %v2827_v9 = vpop.f32.mrb[12].mxu1  ;;  %v2914_v15 = vpop.f32.mrb[14].mxu0  ;;  %v1500_v52 = vld [vmem:[#allocation2 + $0x38] sm:$0xff] (!%p2520_p10) }
 0x273   : > { %1446 = vst.msk [vmem:[#allocation2 + $0x58] sm:$0xff] %vm1434_vm6, %v1429_v51  ;;  %v3353_v19 = vadd.f32 %v2911_v24, %v2827_v9  ;;  %v868_v22 = vpop.f32.mrb[13].mxu1  ;;  %v1408_v23 = vpop.f32.mrb[15].mxu0  ;;  %v1499_v11 = vld [vmem:[#allocation2 + $0x30] sm:$0xff] (!%p2520_p10) }
 0x274   : > { %1445 = vst.msk [vmem:[#allocation2 + $0x50] sm:$0xff] %vm1434_vm6, %v1428_v57  ;;  %v3354_v25 = vadd.f32 %v1396_v41, %v868_v22  ;;  %v3485_v55 = vpop.eup (!%p2520_p10), %3484 }
 0x275   : > { %v1431_v26 = vadd.f32 %v3353_v19, %v226_v61  ;;  %v3931_v0 = vrot.slane (!%p2520_p10), %v3485_v55, %v1512_v53  ;;  %v3487_v17 = vpop.eup (!%p2520_p10), %3486 }
 0x276   : > { %v1430_v27 = vadd.f32 %v3354_v25, %v225_v20  ;;  %v2830_v30 = vpop.f32.mrb[14].mxu1  ;;  %1489 = sbr.rel (%p2520_p10) target bundleno = 785 (0x311), region = 40  ;;  %v1502_v47 = vld [vmem:[#allocation2 + $0x48] sm:$0xff] (!%p2520_p10) }
 0x277   : > { %1448 = vst.msk [vmem:[#allocation2 + $0x68] sm:$0xff] %vm1434_vm6, %v1431_v26  ;;  %v3355_v32 = vadd.f32 %v2914_v15, %v2830_v30  ;;  %v882_v34 = vpop.f32.mrb[15].mxu1  ;;  %v3934_v12 = vmul.f32 (!%p2520_p10), %v3931_v0, %v1493_v58  ;;  %v3937_v13 = vmul.f32 (!%p2520_p10), %v3931_v0, %v1494_v60  ;;  %v3940_v16 = vmul.f32 (!%p2520_p10), %v3931_v0, %v1495_v62  ;;  %v1501_v21 = vld [vmem:[#allocation2 + $0x40] sm:$0xff] (!%p2520_p10) }
 0x278   : > { %1447 = vst.msk [vmem:[#allocation2 + $0x60] sm:$0xff] %vm1434_vm6, %v1430_v27  ;;  %v3356_v37 = vadd.f32 %v1408_v23, %v882_v34  ;;  %v3943_v18 = vmul.f32 (!%p2520_p10), %v3931_v0, %v1496_v3  ;;  %v3946_v36 = vmul.f32 (!%p2520_p10), %v3931_v0, %v1497_v5  ;;  %v3955_v45 = vmul.f32 (!%p2520_p10), %v3931_v0, %v1498_v10 }
 0x279   : > { %v1433_v38 = vadd.f32 %v3355_v32, %v228_v29  ;;  %v1531_v39 = vmul.f32 (!%p2520_p10), %v3934_v12, %v3934_v12  ;;  %v1532_v40 = vmul.f32 (!%p2520_p10), %v3937_v13, %v3937_v13  ;;  %v1533_v43 = vmul.f32 (!%p2520_p10), %v3940_v16, %v3940_v16 }
 0x27a   : > { %v1432_v42 = vadd.f32 %v3356_v37, %v227_v33  ;;  %v1534_v49 = vmul.f32 (!%p2520_p10), %v3943_v18, %v3943_v18  ;;  %v3960_v56 = vmul.f32 (!%p2520_p10), %v3931_v0, %v1499_v11  ;;  %v1535_v59 = vmul.f32 (!%p2520_p10), %v3946_v36, %v3946_v36  ;;  %v1504_v27 = vld [vmem:[#allocation2 + $0x58] sm:$0xff] (!%p2520_p10) }
 0x27b   : > { %1450 = vst.msk [vmem:[#allocation2 + $0x78] sm:$0xff] %vm1434_vm6, %v1433_v38  ;;  %v1547_v63 = vsel (!%p2520_p10), %vm1434_vm6, %v1531_v39, 0.0  ;;  %v1548_v4 = vsel (!%p2520_p10), %vm1434_vm6, %v1532_v40, 0.0  ;;  %v1550_v14 = vsel (!%p2520_p10), %vm1434_vm6, %v1533_v43, 0.0  ;;  %v3968_v31 = vmul.f32 (!%p2520_p10), %v3931_v0, %v1500_v52  ;;  %v1503_v19 = vld [vmem:[#allocation2 + $0x50] sm:$0xff] (!%p2520_p10) }
 0x27c   : > { %1449 = vst.msk [vmem:[#allocation2 + $0x70] sm:$0xff] %vm1434_vm6, %v1432_v42  ;;  %v1549_v24 = vadd.f32 (!%p2520_p10), %v1548_v4, %v1547_v63  ;;  %v1536_v35 = vmul.f32 (!%p2520_p10), %v3955_v45, %v3955_v45  ;;  %v1552_v41 = vsel (!%p2520_p10), %vm1434_vm6, %v1534_v49, 0.0  ;;  %v3974_v57 = vmul.f32 (!%p2520_p10), %v3931_v0, %v1501_v21 }
 0x27d   : > { %v1537_v61 = vmul.f32 %v3960_v56, %v3960_v56  ;;  %v1554_v9 = vsel %vm1434_vm6, %v1535_v59, 0.0  ;;  %v1622_v15 = vmul.f32 %v3487_v17, %v1618_v28  ;;  %v3980_v22 = vmul.f32 %v3931_v0, %v1502_v47 }
 0x27e   : > { %v1551_v51 = vadd.f32 %v1550_v14, %v1549_v24  ;;  %v1538_v23 = vmul.f32 %v3968_v31, %v3968_v31  ;;  %v1556_v25 = vsel %vm1434_vm6, %v1536_v35, 0.0  ;;  %v1525_v30 = vmul.f32 %v3931_v0, %v1503_v19  ;;  %v1506_v48 = vld [vmem:[#allocation2 + $0x68] sm:$0xff] }
 0x27f   : > { %1623 = vst [vmem:[#allocation4] sm:$0x1] %v1622_v15  ;;  %v1624_v26 = vand.u32 2147483647, %v1622_v15  ;;  %v1539_v32 = vmul.f32 %v3974_v57, %v3974_v57  ;;  %v1558_v33 = vsel %vm1434_vm6, %v1537_v61, 0.0  ;;  %v1505_v37 = vld [vmem:[#allocation2 + $0x60] sm:$0xff]  ;;  %v1526_v42 = vmul.f32 %v3931_v0, %v1504_v27 }
 0x280   : > { %v1553_v20 = vadd.f32 %v1552_v41, %v1551_v51  ;;  %v1540_v44 = vmul.f32 %v3980_v22, %v3980_v22  ;;  %v1560_v46 = vsel %vm1434_vm6, %v1538_v23, 0.0  ;;  %v1527_v53 = vmul.f32 %v3931_v0, %v1505_v37 }
 0x281   : > { %v1626_v34 = vsel %vm1625_vm9, %v1624_v26, -inf  ;;  %v1541_v54 = vmul.f32 %v1525_v30, %v1525_v30  ;;  %v1562_v55 = vsel %vm1434_vm6, %v1539_v32, 0.0  ;;  %v1528_v62 = vmul.f32 %v3931_v0, %v1506_v48 }
 0x282   : > { %v1555_v29 = vadd.f32 %v1554_v9, %v1553_v20  ;;  %1627 = vmax.xlane.f32.xlu0 %v1626_v34  ;;  %v1542_v3 = vmul.f32 %v1526_v42, %v1526_v42  ;;  %v1564_v5 = vsel %vm1434_vm6, %v1540_v44, 0.0  ;;  %v1508_v10 = vld [vmem:[#allocation2 + $0x78] sm:$0xff]  ;;  %v1543_v40 = vmul.f32 %v1527_v53, %v1527_v53 }
 0x283   : > { %v1507_v58 = vld [vmem:[#allocation2 + $0x70] sm:$0xff]  ;;  %v1566_v43 = vsel %vm1434_vm6, %v1541_v54, 0.0  ;;  %v1530_v52 = vmul.f32 %v3931_v0, %v1508_v10  ;;  %v1544_v59 = vmul.f32 %v1528_v62, %v1528_v62 }
 0x284   : > { %v1557_v38 = vadd.f32 %v1556_v25, %v1555_v29  ;;  %v1529_v39 = vmul.f32 %v3931_v0, %v1507_v58  ;;  %v1568_v63 = vsel %vm1434_vm6, %v1542_v3, 0.0  ;;  %v1570_v17 = vsel %vm1434_vm6, %v1543_v40, 0.0 }
 0x285   : > { %v1546_v24 = vmul.f32 %v1530_v52, %v1530_v52  ;;  %v1572_v28 = vsel %vm1434_vm6, %v1544_v59, 0.0 }
 0x286   : > { %v1559_v50 = vadd.f32 %v1558_v33, %v1557_v38  ;;  %v1545_v14 = vmul.f32 %v1529_v39, %v1529_v39 }
 0x287   : > { %v1576_v51 = vsel %vm1434_vm6, %v1546_v24, 0.0 }
 0x288   : > { %v1561_v60 = vadd.f32 %v1560_v46, %v1559_v50  ;;  %v1574_v41 = vsel %vm1434_vm6, %v1545_v14, 0.0 }
 0x28a   : > { %v1563_v11 = vadd.f32 %v1562_v55, %v1561_v60 }
 0x28c   : > { %v1565_v49 = vadd.f32 %v1564_v5, %v1563_v11 }
 0x28e   : > { %v1567_v4 = vadd.f32 %v1566_v43, %v1565_v49 }
 0x290   : > { %v1569_v21 = vadd.f32 %v1568_v63, %v1567_v4 }
 0x292   : > { %v1571_v35 = vadd.f32 %v1570_v17, %v1569_v21 }
 0x294   : > { %v1573_v47 = vadd.f32 %v1572_v28, %v1571_v35 }
 0x296   : > { %v1575_v61 = vadd.f32 %v1574_v41, %v1573_v47 }
 0x298   : > { %v1577_v9 = vadd.f32 %v1576_v51, %v1575_v61 }
 0x29a   : > { %v1578_v0 = vrot.slane %v1577_v9, 4 }
 0x29c   : > { %v1579_v15 = vadd.f32 %v1578_v0, %v1577_v9 }
 0x29e   : > { %v1580_v19 = vrot.slane %v1579_v15, 2 }
 0x2a0   : > { %v1581_v20 = vadd.f32 %v1580_v19, %v1579_v15 }
 0x2a2   : > { %v1582_v23 = vrot.slane %v1581_v20, 1 }
 0x2a4   : > { %v1583_v25 = vadd.f32 %v1582_v23, %v1581_v20 }
 0x2a6   : > { %v1584_v26 = vmax.f32 %v1583_v25, 1e-12 }
 0x2a8   : > { %3488 = vrsqrt.f32 %v1584_v26 }
 0x2b2   : > { %v3489_v27 = vpop.eup %3488 }
 0x2b3   : > { %v1586_v29 = vmul.f32 %v3489_v27, %v3934_v12  ;;  %v1587_v32 = vmul.f32 %v3489_v27, %v3937_v13  ;;  %v1588_v33 = vmul.f32 %v3489_v27, %v3940_v16  ;;  %v1589_v34 = vmul.f32 %v3489_v27, %v3943_v18 }
 0x2b4   : > { %v1590_v37 = vmul.f32 %v3489_v27, %v3946_v36  ;;  %v1591_v38 = vmul.f32 %v3489_v27, %v3955_v45  ;;  %v1592_v44 = vmul.f32 %v3489_v27, %v3960_v56  ;;  %v1593_v46 = vmul.f32 %v3489_v27, %v3968_v31 }
 0x2b5   : > { %v1594_v48 = vmul.f32 %v3489_v27, %v3974_v57  ;;  %v1595_v50 = vmul.f32 %v3489_v27, %v3980_v22  ;;  %v1596_v54 = vmul.f32 %v3489_v27, %v1525_v30  ;;  %v1597_v12 = vmul.f32 %v3489_v27, %v1526_v42  ;;  %1602 = vst.msk [vmem:[#allocation6] sm:$0xff] %vm1434_vm6, %v1586_v29 }
 0x2b6   : > { %1603 = vst.msk [vmem:[#allocation6 + $0x8] sm:$0xff] %vm1434_vm6, %v1587_v32  ;;  %1604 = vst.msk [vmem:[#allocation6 + $0x10] sm:$0xff] %vm1434_vm6, %v1588_v33  ;;  %v1598_v13 = vmul.f32 %v3489_v27, %v1527_v53  ;;  %v1599_v16 = vmul.f32 %v3489_v27, %v1528_v62  ;;  %v1600_v18 = vmul.f32 %v3489_v27, %v1529_v39 }
 0x2b7   : > { %1605 = vst.msk [vmem:[#allocation6 + $0x18] sm:$0xff] %vm1434_vm6, %v1589_v34  ;;  %v1601_v36 = vmul.f32 %v3489_v27, %v1530_v52  ;;  %1606 = vst.msk [vmem:[#allocation6 + $0x20] sm:$0xff] %vm1434_vm6, %v1590_v37 }
 0x2b8   : > { %1607 = vst.msk [vmem:[#allocation6 + $0x28] sm:$0xff] %vm1434_vm6, %v1591_v38  ;;  %1608 = vst.msk [vmem:[#allocation6 + $0x30] sm:$0xff] %vm1434_vm6, %v1592_v44 }
 0x2b9   : > { %1609 = vst.msk [vmem:[#allocation6 + $0x38] sm:$0xff] %vm1434_vm6, %v1593_v46  ;;  %1610 = vst.msk [vmem:[#allocation6 + $0x40] sm:$0xff] %vm1434_vm6, %v1594_v48 }
 0x2ba   : > { %1611 = vst.msk [vmem:[#allocation6 + $0x48] sm:$0xff] %vm1434_vm6, %v1595_v50  ;;  %1612 = vst.msk [vmem:[#allocation6 + $0x50] sm:$0xff] %vm1434_vm6, %v1596_v54 }
 0x2bb   : > { %1613 = vst.msk [vmem:[#allocation6 + $0x58] sm:$0xff] %vm1434_vm6, %v1597_v12  ;;  %1614 = vst.msk [vmem:[#allocation6 + $0x60] sm:$0xff] %vm1434_vm6, %v1598_v13 }
 0x2bc   : > { %1615 = vst.msk [vmem:[#allocation6 + $0x68] sm:$0xff] %vm1434_vm6, %v1599_v16  ;;  %1616 = vst.msk [vmem:[#allocation6 + $0x70] sm:$0xff] %vm1434_vm6, %v1600_v18 }
 0x2bd   : > { %1617 = vst.msk [vmem:[#allocation6 + $0x78] sm:$0xff] %vm1434_vm6, %v1601_v36 }
 0x30f   : > { %v1628_v45 = vpop.xlane.xlu0 %1627 }
 0x310   : > { %1630 = vst.msk [vmem:[#allocation8] sm:$0x1] %vm1629_vm10, %v1628_v45 }
 0x311 PF: > { %p2521_p11 = scmp.ne.s32.totalorder %s3559_s10, 1 }
 0x312   : > { %v1635_v56 = vld [vmem:[#allocation6] sm:$0xff] (!%p2521_p11)  ;;  %v1636_v31 = vld [vmem:[#allocation6 + $0x8] sm:$0xff] (!%p2521_p11)  ;;  %v1637_v57 = vld [vmem:[#allocation6 + $0x10] sm:$0xff] (!%p2521_p11)  ;;  %v4033_v22 = vand.u32 (!%p2521_p11), 4294901760, %v3636_v1  ;;  %v3577_v62 = vmov (!%p2521_p11), 0   ;;  %v4109_v26 = vand.u32 (!%p2521_p11), 4294901760, %v3638_v2 }
 0x313   : > { %1634 = sbr.rel (%p2521_p11) target bundleno = 1284 (0x504), region = 44  ;;  %v1652_v30 = vand.u32 (!%p2521_p11), 4294901760, %v1635_v56  ;;  %v1655_v42 = vand.u32 (!%p2521_p11), 4294901760, %v1636_v31  ;;  %v1638_v53 = vld [vmem:[#allocation6 + $0x18] sm:$0xff] (!%p2521_p11)  ;;  %v1658_v55 = vand.u32 (!%p2521_p11), 4294901760, %v1637_v57  ;;  %v4035_v58 = vld [vmem:[#allocation6 + $0x20] sm:$0xff] (!%p2521_p11)  ;;  %3490 = vset.pattern.permute.xlu0 (!%p2521_p11), %v3577_v62 }
 0x314   : > { %v4037_v60 = vld [vmem:[#allocation6 + $0x28] sm:$0xff] (!%p2521_p11)  ;;  %v1661_v3 = vand.u32 (!%p2521_p11), 4294901760, %v1638_v53  ;;  %v4041_v5 = vsub.f32 (!%p2521_p11), %v3636_v1, %v4033_v22  ;;  %v1664_v11 = vand.u32 (!%p2521_p11), 4294901760, %v4035_v58  ;;  %v4049_v43 = vld [vmem:[#allocation6 + $0x30] sm:$0xff] (!%p2521_p11)  ;;  %v4051_v49 = vld [vmem:[#allocation6 + $0x38] sm:$0xff] (!%p2521_p11)  ;;  %v4135_v48 = vsub.f32 (!%p2521_p11), %v3638_v2, %v4109_v26  ;;  %p2526_p12 = scmp.ne.s32.totalorder (!%p2521_p11), %s3555_s9, 2 }
 0x315   : > { %v4043_v10 = vpack.c.bf16 (!%p2521_p11), %v1655_v42, %v1652_v30  ;;  %v1667_v39 = vand.u32 (!%p2521_p11), 4294901760, %v4037_v60  ;;  %v1670_v4 = vand.u32 (!%p2521_p11), 4294901760, %v4049_v43  ;;  %v1673_v14 = vand.u32 (!%p2521_p11), 4294901760, %v4051_v49  ;;  %v4066_v17 = vld [vmem:[#allocation6 + $0x40] sm:$0xff] (!%p2521_p11)  ;;  %v4068_v21 = vld [vmem:[#allocation6 + $0x48] sm:$0xff] (!%p2521_p11)  ;;  %v4084_v51 = vld [vmem:[#allocation6 + $0x50] sm:$0xff] (!%p2521_p11) }
 0x316   : > { %v4047_v40 = vpack.c.bf16 (!%p2521_p11), %v1661_v3, %v1658_v55  ;;  %v1734_v52 = vand.u32 (!%p2521_p11), 4294901760, %v4041_v5  ;;  %v1676_v41 = vand.u32 (!%p2521_p11), 4294901760, %v4066_v17  ;;  %v1679_v47 = vand.u32 (!%p2521_p11), 4294901760, %v4068_v21  ;;  %v4086_v61 = vld [vmem:[#allocation6 + $0x58] sm:$0xff] (!%p2521_p11)  ;;  %v4100_v19 = vld [vmem:[#allocation6 + $0x60] sm:$0xff] (!%p2521_p11)  ;;  %v4106_v25 = vld [vmem:[#allocation6 + $0x68] sm:$0xff] (!%p2521_p11) }
 0x317   : > { %3150 = vmatprep.subr.bf16.mxu1 (!%p2521_p11), %v4043_v10  ;;  %3246 = vmatprep.subr.bf16.mxu0 (!%p2521_p11), %v4043_v10  ;;  %v4058_v59 = vld [vmem:[#allocation8] ss:$0 sm:$0xff] (!%p2521_p11)  ;;  %v4062_v63 = vpack.c.bf16 (!%p2521_p11), %v1667_v39, %v1664_v11  ;;  %v4080_v35 = vpack.c.bf16 (!%p2521_p11), %v1673_v14, %v1670_v4  ;;  %v1682_v9 = vand.u32 (!%p2521_p11), 4294901760, %v4084_v51  ;;  %v1685_v15 = vand.u32 (!%p2521_p11), 4294901760, %v4086_v61  ;;  %v4127_v37 = vld [vmem:[#allocation6 + $0x70] sm:$0xff] (!%p2521_p11)  ;;  %v4129_v38 = vld [vmem:[#allocation6 + $0x78] sm:$0xff] (!%p2521_p11) }
 0x318   : > { %3152 = vmatpush3.bf16.msra.mxu1 (!%p2521_p11), %v4043_v10  ;;  %3248 = vmatpush3.bf16.msra.mxu0 (!%p2521_p11), %v4043_v10  ;;  %v1735_v24 = vsub.f32 (!%p2521_p11), %v4041_v5, %v1734_v52  ;;  %v4097_v0 = vpack.c.bf16 (!%p2521_p11), %v1679_v47, %v1676_v41  ;;  %v4102_v20 = vsub.f32 (!%p2521_p11), %v1635_v56, %v1652_v30  ;;  %v1688_v27 = vand.u32 (!%p2521_p11), 4294901760, %v4100_v19 }
 0x319   : > { %3154 = vmatprep.subr.bf16.mxu1 (!%p2521_p11), %v4047_v40  ;;  %3250 = vmatprep.subr.bf16.mxu0 (!%p2521_p11), %v4047_v40  ;;  %v4104_v23 = vsub.f32 (!%p2521_p11), %v1636_v31, %v1655_v42  ;;  %v4114_v29 = vsub.f32 (!%p2521_p11), %v1637_v57, %v1658_v55  ;;  %v4116_v32 = vsub.f32 (!%p2521_p11), %v1638_v53, %v1661_v3  ;;  %v1691_v34 = vand.u32 (!%p2521_p11), 4294901760, %v4106_v25 }
 0x31a   : > { %3052 = vmatprep.mubr.f32.mxu0 %v1734_v52  ;;  %2378 = vperm.xlu0 %3490, %v4058_v59   ;;  %v1736_v28 = vand.u32 4294901760, %v1735_v24  ;;  %v4124_v33 = vpack.c.bf16 %v1685_v15, %v1682_v9  ;;  %v1755_v44 = vand.u32 4294901760, %v4102_v20  ;;  %v4138_v50 = vsub.f32 %v4035_v58, %v1664_v11 }
 0x31b   : > { %v1762_v46 = vand.u32 4294901760, %v4104_v23  ;;  %v4141_v54 = vsub.f32 %v4037_v60, %v1667_v39  ;;  %v1694_v12 = vand.u32 4294901760, %v4127_v37  ;;  %v1697_v13 = vand.u32 4294901760, %v4129_v38 }
 0x31c   : > { %3156 = vmatpush3.bf16.msra.mxu1 %v4047_v40  ;;  %3252 = vmatpush3.bf16.msra.mxu0 %v4047_v40  ;;  %v1769_v16 = vand.u32 4294901760, %v4114_v29  ;;  %v1776_v18 = vand.u32 4294901760, %v4116_v32  ;;  %v4155_v36 = vpack.c.bf16 %v1691_v34, %v1688_v27  ;;  %v1756_v45 = vsub.f32 %v4102_v20, %v1755_v44 }
 0x31d   : > { %3158 = vmatprep.subr.bf16.mxu1 %v4062_v63  ;;  %3254 = vmatprep.subr.bf16.mxu0 %v4062_v63  ;;  %v1763_v56 = vsub.f32 %v4104_v23, %v1762_v46  ;;  %v1744_v31 = vand.u32 4294901760, %v4135_v48  ;;  %v1783_v57 = vand.u32 4294901760, %v4138_v50  ;;  %v1790_v30 = vand.u32 4294901760, %v4141_v54 }
 0x31e   : > { %2947 = vmatprep.mubr.f32.mxu1 %v1736_v28  ;;  %v4168_v42 = vpack.c.bf16 %v1697_v13, %v1694_v12  ;;  %v1770_v53 = vsub.f32 %v4114_v29, %v1769_v16  ;;  %v1777_v55 = vsub.f32 %v4116_v32, %v1776_v18  ;;  %v1757_v58 = vand.u32 4294901760, %v1756_v45 }
 0x31f   : > { %v1764_v60 = vand.u32 4294901760, %v1763_v56  ;;  %v4177_v62 = vsub.f32 %v4049_v43, %v1670_v4  ;;  %v4182_v3 = vsub.f32 %v4051_v49, %v1673_v14  ;;  %v3277_v11 = vpack.c.bf16 %v1762_v46, %v1755_v44 }
 0x320   : > { %3160 = vmatpush3.bf16.msra.mxu1 %v4062_v63  ;;  %3256 = vmatpush3.bf16.msra.mxu0 %v4062_v63  ;;  %v1745_v39 = vsub.f32 %v4135_v48, %v1744_v31  ;;  %v1784_v52 = vsub.f32 %v4138_v50, %v1783_v57  ;;  %v1791_v24 = vsub.f32 %v4141_v54, %v1790_v30  ;;  %v1771_v28 = vand.u32 4294901760, %v1770_v53 }
 0x321   : > { %3162 = vmatprep.subr.bf16.mxu1 %v4080_v35  ;;  %3258 = vmatprep.subr.bf16.mxu0 %v4080_v35  ;;  %v1778_v45 = vand.u32 4294901760, %v1777_v55  ;;  %v4192_v43 = vsub.f32 %v4066_v17, %v1676_v41  ;;  %v4197_v49 = vsub.f32 %v4068_v21, %v1679_v47  ;;  %v3181_v4 = vpack.c.bf16 %v1764_v60, %v1757_v58 }
 0x322   : > { %v1797_v14 = vand.u32 4294901760, %v4177_v62  ;;  %v1804_v44 = vand.u32 4294901760, %v4182_v3  ;;  %v2336_v46 = vmul.f32 %v3638_v2, %v3638_v2  ;;  %v1746_v56 = vand.u32 4294901760, %v1745_v39 }
 0x323   : > { %v3281_v17 = vpack.c.bf16 %v1776_v18, %v1769_v16  ;;  %v4208_v41 = vsub.f32 %v4084_v51, %v1682_v9  ;;  %v1785_v21 = vand.u32 4294901760, %v1784_v52  ;;  %v1811_v47 = vand.u32 4294901760, %v4192_v43 }
 0x324   : > { %3164 = vmatpush3.bf16.msra.mxu1 %v4080_v35  ;;  %3260 = vmatpush3.bf16.msra.mxu0 %v4080_v35  ;;  %v1818_v53 = vand.u32 4294901760, %v4197_v49  ;;  %v4217_v55 = vsub.f32 %v4086_v61, %v1685_v15  ;;  %v3185_v16 = vpack.c.bf16 %v1778_v45, %v1771_v28  ;;  %v1792_v51 = vand.u32 4294901760, %v1791_v24 }
 0x325   : > { %3166 = vmatprep.subr.bf16.mxu1 %v4097_v0  ;;  %3262 = vmatprep.subr.bf16.mxu0 %v4097_v0  ;;  %v1798_v9 = vsub.f32 %v4177_v62, %v1797_v14  ;;  %v1805_v18 = vsub.f32 %v4182_v3, %v1804_v44  ;;  %v3285_v58 = vpack.c.bf16 %v1790_v30, %v1783_v57  ;;  %v1825_v60 = vand.u32 4294901760, %v4208_v41 }
 0x326   : > { %2339 = vadd.xlane.f32.xlu1 %v2336_v46  ;;  %v2335_v39 = vmul.f32 %v3636_v1, %v3636_v1  ;;  %v1812_v61 = vsub.f32 %v4192_v43, %v1811_v47  ;;  %v1819_v15 = vsub.f32 %v4197_v49, %v1818_v53  ;;  %v1832_v52 = vand.u32 4294901760, %v4217_v55 }
 0x327   : > { %v4230_v24 = vsub.f32 %v4100_v19, %v1688_v27  ;;  %v1799_v57 = vand.u32 4294901760, %v1798_v9  ;;  %v1806_v30 = vand.u32 4294901760, %v1805_v18  ;;  %v3289_v28 = vpack.c.bf16 %v1804_v44, %v1797_v14 }
 0x328   : > { %3168 = vmatpush3.bf16.msra.mxu1 %v4097_v0  ;;  %3264 = vmatpush3.bf16.msra.mxu0 %v4097_v0  ;;  %v1826_v45 = vsub.f32 %v4208_v41, %v1825_v60  ;;  %v1813_v19 = vand.u32 4294901760, %v1812_v61  ;;  %v1820_v27 = vand.u32 4294901760, %v1819_v15  ;;  %v4246_v14 = vsub.f32 %v4127_v37, %v1694_v12 }
 0x329   : > { %3170 = vmatprep.subr.bf16.mxu1 %v4124_v33  ;;  %3266 = vmatprep.subr.bf16.mxu0 %v4124_v33  ;;  %v1839_v46 = vand.u32 4294901760, %v4230_v24  ;;  %v4251_v44 = vsub.f32 %v4129_v38, %v1697_v13  ;;  %v3297_v13 = vpack.c.bf16 %v1832_v52, %v1825_v60  ;;  %vm2347_vm11 = vcmask 64512  }
 0x32a   : > { %v1853_v37 = vand.u32 4294901760, %v4246_v14  ;;  %vm2413_vm15 = vcmask 7168   ;;  %vm2424_vm3 = vcmask 0  }
 0x32b   : > { %v1860_v12 = vand.u32 4294901760, %v4251_v44 }
 0x32c   : > { %3172 = vmatpush3.bf16.msra.mxu1 %v4124_v33  ;;  %3268 = vmatpush3.bf16.msra.mxu0 %v4124_v33 }
 0x32d   : > { %3174 = vmatprep.subr.bf16.mxu1 %v4155_v36  ;;  %3270 = vmatprep.subr.bf16.mxu0 %v4155_v36 }
 0x330   : > { %3176 = vmatpush3.bf16.msra.mxu1 %v4155_v36  ;;  %3272 = vmatpush3.bf16.msra.mxu0 %v4155_v36 }
 0x331   : > { %3178 = vmatprep.subr.bf16.mxu1 %v4168_v42  ;;  %3274 = vmatprep.subr.bf16.mxu0 %v4168_v42 }
 0x334   : > { %3180 = vmatpush3.bf16.msra.mxu1 %v4168_v42  ;;  %3276 = vmatpush3.bf16.msra.mxu0 %v4168_v42 }
 0x335   : > { %3182 = vmatprep.subr.bf16.mxu1 %v3181_v4  ;;  %3278 = vmatprep.subr.bf16.mxu0 %v3277_v11 }
 0x337   : > { %2948 = vmatmul.mubr.f32.vlgmr.msra.gmra.mrb[0].mxu1 %v1746_v56  ;;  %3053 = vmatmul.mubr.f32.vlgmr.msra.gmra.mrb[0].mxu0 %v1744_v31  ;;  %v3189_v31 = vpack.c.bf16 %v1792_v51, %v1785_v21  ;;  %v3197_v56 = vpack.c.bf16 %v1820_v27, %v1813_v19  ;;  %v1827_v21 = vand.u32 4294901760, %v1826_v45  ;;  %v1840_v51 = vsub.f32 %v4230_v24, %v1839_v46 }
 0x338   : > { %3184 = vmatpush3.bf16.msra.mxu1 %v3181_v4  ;;  %3280 = vmatpush3.bf16.msra.mxu0 %v3277_v11  ;;  %v4235_v11 = vsub.f32 %v4106_v25, %v1691_v34  ;;  %v1833_v4 = vsub.f32 %v4217_v55, %v1832_v52  ;;  %v3193_v25 = vpack.c.bf16 %v1806_v30, %v1799_v57 }
 0x339   : > { %3186 = vmatprep.subr.bf16.mxu1 %v3185_v16  ;;  %3282 = vmatprep.subr.bf16.mxu0 %v3281_v17  ;;  %v1841_v18 = vand.u32 4294901760, %v1840_v51  ;;  %v3305_v52 = vpack.c.bf16 %v1860_v12, %v1853_v37  ;;  %v3213_v57 = vpack.c.bf16 %v4104_v23, %v4102_v20  ;;  %v3217_v30 = vpack.c.bf16 %v4116_v32, %v4114_v29  ;;  %v2524_v32 = vld [vmem:[#allocation4] ss:$0 sm:$0xff] }
 0x33a   : > { %2982 = vmatprep.mubr.f32.mxu1 %v4033_v22  ;;  %3087 = vmatprep.mubr.f32.mxu0 %v4033_v22  ;;  %v1846_v34 = vand.u32 4294901760, %v4235_v11  ;;  %v3221_v20 = vpack.c.bf16 %v4141_v54, %v4138_v50  ;;  %v3225_v23 = vpack.c.bf16 %v4182_v3, %v4177_v62 }
 0x33b   : > { %2337 = vadd.xlane.f32.xlu0 %v2335_v39 }
 0x33c   : > { %3188 = vmatpush3.bf16.msra.mxu1 %v3185_v16  ;;  %3284 = vmatpush3.bf16.msra.mxu0 %v3281_v17  ;;  %v3293_v17 = vpack.c.bf16 %v1818_v53, %v1811_v47  ;;  %v1834_v16 = vand.u32 4294901760, %v1833_v4  ;;  %v1847_v9 = vsub.f32 %v4235_v11, %v1846_v34  ;;  %v1854_v53 = vsub.f32 %v4246_v14, %v1853_v37 }
 0x33d   : > { %3190 = vmatprep.subr.bf16.mxu1 %v3189_v31  ;;  %3286 = vmatprep.subr.bf16.mxu0 %v3285_v58  ;;  %v3301_v61 = vpack.c.bf16 %v1846_v34, %v1839_v46 }
 0x33e   : > { %v3201_v38 = vpack.c.bf16 %v1834_v16, %v1827_v21  ;;  %v1848_v47 = vand.u32 4294901760, %v1847_v9  ;;  %v1855_v15 = vand.u32 4294901760, %v1854_v53 }
 0x340   : > { %3192 = vmatpush3.bf16.msra.mxu1 %v3189_v31  ;;  %3288 = vmatpush3.bf16.msra.mxu0 %v3285_v58  ;;  %v1861_v58 = vsub.f32 %v4251_v44, %v1860_v12  ;;  %v3205_v39 = vpack.c.bf16 %v1848_v47, %v1841_v18 }
 0x341   : > { %3194 = vmatprep.subr.bf16.mxu1 %v3193_v25  ;;  %3290 = vmatprep.subr.bf16.mxu0 %v3289_v28 }
 0x342   : > { %v1862_v31 = vand.u32 4294901760, %v1861_v58 }
 0x344   : > { %3196 = vmatpush3.bf16.msra.mxu1 %v3193_v25  ;;  %3292 = vmatpush3.bf16.msra.mxu0 %v3289_v28  ;;  %v3209_v60 = vpack.c.bf16 %v1862_v31, %v1855_v15 }
 0x345   : > { %3198 = vmatprep.subr.bf16.mxu1 %v3197_v56  ;;  %3294 = vmatprep.subr.bf16.mxu0 %v3293_v17 }
 0x348   : > { %3200 = vmatpush3.bf16.msra.mxu1 %v3197_v56  ;;  %3296 = vmatpush3.bf16.msra.mxu0 %v3293_v17 }
 0x349   : > { %3202 = vmatprep.subr.bf16.mxu1 %v3201_v38  ;;  %3298 = vmatprep.subr.bf16.mxu0 %v3297_v13 }
 0x34c   : > { %3204 = vmatpush3.bf16.msra.mxu1 %v3201_v38  ;;  %3300 = vmatpush3.bf16.msra.mxu0 %v3297_v13 }
 0x34d   : > { %3206 = vmatprep.subr.bf16.mxu1 %v3205_v39  ;;  %3302 = vmatprep.subr.bf16.mxu0 %v3301_v61 }
 0x350   : > { %3208 = vmatpush3.bf16.msra.mxu1 %v3205_v39  ;;  %3304 = vmatpush3.bf16.msra.mxu0 %v3301_v61 }
 0x351   : > { %3210 = vmatprep.subr.bf16.mxu1 %v3209_v60  ;;  %3306 = vmatprep.subr.bf16.mxu0 %v3305_v52 }
 0x354   : > { %3212 = vmatpush3.bf16.msra.mxu1 %v3209_v60  ;;  %3308 = vmatpush3.bf16.msra.mxu0 %v3305_v52 }
 0x355   : > { %3214 = vmatprep.subr.bf16.mxu1 %v3213_v57  ;;  %3310 = vmatprep.subr.bf16.mxu0 %v4043_v10 }
 0x357   : > { %2983 = vmatmul.mubr.f32.vlgmr.msra.gmra.mrb[0].mxu1 %v4109_v26  ;;  %3088 = vmatmul.mubr.f32.vlgmr.msra.gmra.mrb[0].mxu0 %v4109_v26 }
 0x358   : > { %3216 = vmatpush3.bf16.msra.mxu1 %v3213_v57  ;;  %3312 = vmatpush3.bf16.msra.mxu0 %v4043_v10  ;;  %v3237_v10 = vpack.c.bf16 %v4235_v11, %v4230_v24  ;;  %v2412_v57 = vld [vmem:[#allocation7] sm:$0x1] }
 0x359   : > { %3218 = vmatprep.subr.bf16.mxu1 %v3217_v30  ;;  %3314 = vmatprep.subr.bf16.mxu0 %v4047_v40 }
 0x35a   : > { %3017 = vmatprep.mubr.f32.mxu1 %v4041_v5  ;;  %3122 = vmatprep.mubr.f32.mxu0 %v4033_v22  ;;  %v3229_v5 = vpack.c.bf16 %v4197_v49, %v4192_v43  ;;  %v3233_v22 = vpack.c.bf16 %v4217_v55, %v4208_v41 }
 0x35c   : > { %3220 = vmatpush3.bf16.msra.mxu1 %v3217_v30  ;;  %3316 = vmatpush3.bf16.msra.mxu0 %v4047_v40  ;;  %v3241_v40 = vpack.c.bf16 %v4251_v44, %v4246_v14 }
 0x35d   : > { %3222 = vmatprep.subr.bf16.mxu1 %v3221_v20  ;;  %3318 = vmatprep.subr.bf16.mxu0 %v4062_v63 }
 0x360   : > { %3224 = vmatpush3.bf16.msra.mxu1 %v3221_v20  ;;  %3320 = vmatpush3.bf16.msra.mxu0 %v4062_v63  ;;  %v2357_v63 = vmul.f32 1000000.0, %v3636_v1 }
 0x361   : > { %3226 = vmatprep.subr.bf16.mxu1 %v3225_v23  ;;  %3322 = vmatprep.subr.bf16.mxu0 %v4080_v35 }
 0x364   : > { %3228 = vmatpush3.bf16.msra.mxu1 %v3225_v23  ;;  %3324 = vmatpush3.bf16.msra.mxu0 %v4080_v35  ;;  %v2358_v35 = vmul.f32 1000000.0, %v3638_v2 }
 0x365   : > { %3230 = vmatprep.subr.bf16.mxu1 %v3229_v5  ;;  %3326 = vmatprep.subr.bf16.mxu0 %v4097_v0 }
 0x366   : > { %v2523_v29 = vclamps-f32 %v2358_v35, 1.0 }
 0x368   : > { %3232 = vmatpush3.bf16.msra.mxu1 %v3229_v5  ;;  %3328 = vmatpush3.bf16.msra.mxu0 %v4097_v0  ;;  %v2522_v0 = vclamps-f32 %v2357_v63, 1.0  ;;  %v2370_v50 = vmul.f32 %v2524_v32, %v2523_v29 }
 0x369   : > { %3234 = vmatprep.subr.bf16.mxu1 %v3233_v22  ;;  %3330 = vmatprep.subr.bf16.mxu0 %v4124_v33 }
 0x36c   : > { %3236 = vmatpush3.bf16.msra.mxu1 %v3233_v22  ;;  %3332 = vmatpush3.bf16.msra.mxu0 %v4124_v33  ;;  %v2369_v33 = vmul.f32 %v2524_v32, %v2522_v0 }
 0x36d   : > { %3238 = vmatprep.subr.bf16.mxu1 %v3237_v10  ;;  %3334 = vmatprep.subr.bf16.mxu0 %v4155_v36 }
 0x370   : > { %3240 = vmatpush3.bf16.msra.mxu1 %v3237_v10  ;;  %3336 = vmatpush3.bf16.msra.mxu0 %v4155_v36 }
 0x371   : > { %3242 = vmatprep.subr.bf16.mxu1 %v3241_v40  ;;  %3338 = vmatprep.subr.bf16.mxu0 %v4168_v42 }
 0x374   : > { %3244 = vmatpush3.bf16.msra.mxu1 %v3241_v40  ;;  %3340 = vmatpush3.bf16.msra.mxu0 %v4168_v42 }
 0x377   : > { %3018 = vmatmul.mubr.f32.vlgmr.msra.gmra.mrb[0].mxu1 %v4135_v48  ;;  %3123 = vmatmul.mubr.f32.vlgmr.msra.gmra.mrb[0].mxu0 %v4109_v26 }
 0x399   : > { %v2379_v54 = vpop.permute.xlu0 %2378 }
 0x39a   : > { %v2381_v36 = vsub.f32 %v2369_v33, %v2379_v54  ;;  %v2382_v62 = vsub.f32 %v2370_v50, %v2379_v54 }
 0x39c   : > { %v2383_v3 = vmul.f32 1.442695, %v2381_v36  ;;  %v2385_v43 = vmul.f32 1.442695, %v2382_v62 }
 0x39e   : > { %3491 = vpow2.f32 %v2383_v3 }
 0x39f   : > { %3493 = vpow2.f32 %v2385_v43 }
 0x3a8   : > { %v3492_v42 = vpop.eup %3491 }
 0x3a9   : > { %2387 = vadd.xlane.f32.xlu1 %v3492_v42  ;;  %v3494_v48 = vpop.eup %3493 }
 0x3ad   : > { %2389 = vadd.xlane.f32.xlu1 %v3494_v48 }
 0x3b1   : > { %2398 = vmax.xlane.f32.xlu1 %v3636_v1 }
 0x3b3   : > { %v2340_v1 = vpop.xlane.xlu1 %2339 }
 0x3b4   : > { %v2342_v14 = vmax.f32 %v2340_v1, 1e-12 }
 0x3c8   : > { %v2338_v25 = vpop.xlane.xlu0 %2337 }
 0x3c9   : > { %v2341_v34 = vmax.f32 %v2338_v25, 1e-12 }
 0x436   : > { %v2388_v4 = vpop.xlane.xlu1 %2387 }
 0x437   : > { %3495 = vlog2.f32 %v2388_v4 }
 0x43a   : > { %v2390_v46 = vpop.xlane.xlu1 %2389 }
 0x43b   : > { %3497 = vlog2.f32 %v2390_v46 }
 0x43c   : > { %3499 = vrsqrt.f32 %v2341_v34 }
 0x43d   : > { %3501 = vrsqrt.f32 %v2342_v14 }
 0x43e   : > { %v2399_v8 = vpop.xlane.xlu1 %2398 }
 0x43f   : > { %vm2402_vm12 = vcmp.gt.f32.partialorder %v2399_v8, 0.9 }
 0x441   : > { %v3496_v44 = vpop.eup %3495 }
 0x442   : > { %v2392_v7 = vmul.f32 0.6931472, %v3496_v44 }
 0x444   : > { %v2396_v37 = vadd.f32 %v4058_v59, %v2392_v7 }
 0x445   : > { %v3498_v56 = vpop.eup %3497 }
 0x446   : > { %v2394_v17 = vmul.f32 0.6931472, %v3498_v56  ;;  %v3500_v21 = vpop.eup %3499 }
 0x447   : > { %v3502_v16 = vpop.eup %3501 }
 0x44a   : > { %v3019_v26 = vpop.f32.mrb[0].mxu1  ;;  %v3124_v49 = vpop.f32.mrb[0].mxu0 }
 0x44b   : > { %v3421_v41 = vadd.f32 %v3124_v49, %v3019_v26  ;;  %v2009_v55 = vpop.f32.mrb[1].mxu1  ;;  %v2325_v24 = vpop.f32.mrb[1].mxu0 }
 0x44c   : > { %v3422_v11 = vadd.f32 %v2325_v24, %v2009_v55 }
 0x44d   : > { %v2346_v28 = vsel %vm179_vm1, %v3421_v41, 0.0 }
 0x44e   : > { %v2351_v45 = vsel %vm2347_vm11, %v2346_v28, 0.0  ;;  %v2345_v19 = vsel %vm178_vm0, %v3422_v11, 0.0 }
 0x44f   : > { %2352 = vadd.xlane.f32.xlu1 %v2351_v45  ;;  %v2348_v27 = vsel %vm2347_vm11, %v2345_v19, 0.0 }
 0x453   : > { %2349 = vadd.xlane.f32.xlu1 %v2348_v27 }
 0x457   : > { %2400 = vmax.xlane.f32.xlu1 %v3638_v2  ;;  %v2397_v2 = vadd.f32 %v4058_v59, %v2394_v17 }
 0x4dc   : > { %v2353_v6 = vpop.xlane.xlu1 %2352 }
 0x4dd   : > { %v2355_v9 = vmul.f32 %v3502_v16, %v2353_v6 }
 0x4df   : > { %v2409_v18 = vsub.f32 %v2397_v2, %v2355_v9  ;;  %vm2405_vm0 = vcmp.gt.f32.partialorder %v2355_v9, 0.1 }
 0x4e0   : > { %v2350_v51 = vpop.xlane.xlu1 %2349 }
 0x4e1   : > { %v2354_v12 = vmul.f32 %v3500_v21, %v2350_v51 }
 0x4e3   : > { %vm2404_vm13 = vcmp.gt.f32.partialorder %v2354_v12, 0.1  ;;  %v2408_v38 = vsub.f32 %v2396_v37, %v2354_v12 }
 0x4e4   : > { %vm2406_vm14 = vmand %vm2402_vm12, %vm2404_vm13  ;;  %v2401_v13 = vpop.xlane.xlu1 %2400 }
 0x4e5   : > { %v2410_v47 = vsel %vm2406_vm14, %v2408_v38, 0.0  ;;  %vm2403_vm1 = vcmp.gt.f32.partialorder %v2401_v13, 0.9 }
 0x4e6   : > { %vm2407_vm2 = vmand %vm2403_vm1, %vm2405_vm0  ;;  %v2414_v58 = vsel %vm2413_vm15, %v2410_v47, 0.0 }
 0x4e7   : > { %v2411_v53 = vsel %vm2407_vm2, %v2409_v18, 0.0 }
 0x4e8   : > { %v2415_v39 = vsel %vm2413_vm15, %v2411_v53, 0.0 }
 0x4e9   : > { %v2416_v61 = vadd.f32 %v2415_v39, %v2414_v58 }
 0x4eb   : > { %v2417_v15 = vrot.slane %v2416_v61, 4 }
 0x4ed   : > { %v2418_v31 = vadd.f32 %v2417_v15, %v2416_v61 }
 0x4ef   : > { %v2419_v60 = vrot.slane %v2418_v31, 2 }
 0x4f1   : > { %v2420_v59 = vadd.f32 %v2419_v60, %v2418_v31 }
 0x4f3   : > { %v2421_v52 = vrot.slane %v2420_v59, 1  ;;  %2429 = sbr.rel (%p2526_p12) target bundleno = 1284 (0x504), region = 48 }
 0x4f5   : > { %v2422_v30 = vadd.f32 %v2421_v52, %v2420_v59 }
 0x4f7   : > { %v2423_v20 = vadd.f32 %v2422_v30, %v2412_v57 }
 0x4f9   : > { %2425 = vst.msk [vmem:[#allocation7] sm:$0x1] %vm2424_vm3, %v2423_v20 }
 0x500   : > { %v2430_v23 = vld [vmem:[#allocation7] sm:$0x1] }
 0x501   : > { %v2431_v5 = vmul.f32 0.020833334, %v2430_v23 }
 0x503   : > { %2432 = vst.msk [vmem:[#allocation9] sm:$0x1] %vm2424_vm3, %v2431_v5 }
 0x504 PF: > { %p4312_p13 = scmp.eq.s32.totalorder %s2503_s14, 5  ;;  %s3578_s26 = smov [#allocation9]  }
 0x505   : > { %s2440_s27 = sshll.u32 %s3578_s26, 4  ;;  %s2441_s27 = int_to_ptr.vmem [resolvable:$true] %s2440_s27 }
 0x506   : > { %s3503_s28 = scalar_lea.vmem %s2441_s27, 16  ;;  %s3509_s29 = scalar_lea.vmem %s2441_s27, 32 }
 0x507   : > { %p3504_p0 = scmp.ne.s32.totalorder %s2441_s27, %s3503_s28  ;;  %p3510_p3 = scmp.lt.s32.totalorder %s2441_s27, %s2441_s27 }
 0x508   : > { %p3511_p4 = scmp.lt.s32.totalorder %s3509_s29, %s3503_s28 }
 0x509   : > { %p3505_p1 = pnand %p3504_p0, %p4312_p13 }
 0x50a   : > { %p3512_p5 = por %p3511_p4, %p3510_p3 }
 0x50b   : > { %p3506_p2 = pneg %p3505_p1 }
 0x50d   : > { %p3513_p6 = pnand %p3512_p5, %p3506_p2 }
 0x50f   : > { %3516 = shalt.err (!%p3513_p6)
}
 0x510   : > { %s3517_s4 = scalar_lea.hbm %s4355_s2, 16 }
 0x511   : > { %p3518_p7 = scmp.ne.s32.totalorder %s4355_s2, %s3517_s4  ;;  %p3523_p10 = scmp.lt.u32.totalorder %s3517_s4, %s4355_s2 }
 0x513   : > { %p3519_p8 = pnand %p3518_p7, %p4312_p13 }
 0x515   : > { %p3520_p9 = pneg %p3519_p8 }
 0x517   : > { %p3525_p11 = pnand %p3523_p10, %p3520_p9 }
 0x519   : > { %3528 = shalt.err (!%p3525_p11)
}
 0x51a   : > { %3432 = dma.vmem_to_hbm [thread:$0]  (%p4312_p13), %s2441_s27, 16, %s4355_s2, [#allocation10]  }
 0x51b   : > { %3550 = dma.done.wait (%p4312_p13), [#allocation10], 16  }
 0x51c   : > { %3552 = vsyncadd (%p4312_p13), [#allocation10], 4294967280 }
 0x51d PF: > { %s13_s13 = sadd.s32 1, %s3571_s13   ;;  %s4359_s9 = smov %s3563_s11 }
 0x51e   : > { %p10_p12 = scmp.ge.s32.totalorder %s13_s13, 8   ;;  %s4360_s10 = smov %s3567_s12 }
 0x51f   : > { %s4361_s11 = smov %s4364_s15  ;;  %s4362_s12 = smov %s4368_s16 }
 0x520   :  { %12 = sbr.rel (!%p10_p12) target bundleno = 3 (0x3), region = 78 }
 0x527   :  { %2453 = vsyncpa [#allocation10], 1 }
 0x528   :  { %2455 = vsyncpa [#allocation10 + $0x1], 1 }

</bundles_post_ra>
